<compile_context>
chip_gen: v7x
topology: tpu7x:2x2x1
jax: 0.10.0
libtpu: 0.0.40
codegen_flags: <defaults>
</compile_context>

<pallas_src>
import math
from functools import partial

import jax
import jax.numpy as jnp
from jax.experimental import pallas as pl
from jax.experimental.pallas import tpu as pltpu

LN_EPS = 1e-5          # nn.LayerNorm default
NEG_INF = -1e30        # finite "-inf" for masking (avoids inf-inf NaNs)


# ----------------------------------------------------------------------------
# small helpers
# ----------------------------------------------------------------------------
def _round_up(x, m):
    return (x + m - 1) // m * m


def _pick_tile(dim, max_tile, align):
    """Largest tile <= max_tile that is `align`-aligned (max_tile must be too)."""
    if dim >= max_tile:
        return max_tile
    return _round_up(dim, align)


def _pad2d(a, rows, cols):
    r, c = a.shape
    if r == rows and c == cols:
        return a
    return jnp.pad(a, ((0, rows - r), (0, cols - c)))


# ----------------------------------------------------------------------------
# Tiled matmul + bias (+ReLU) kernel
# ----------------------------------------------------------------------------
def _matmul_bias_kernel(x_ref, w_ref, b_ref, o_ref, acc_ref, *, activation):
    k = pl.program_id(2)

    @pl.when(k == 0)
    def _():
        acc_ref[...] = jnp.zeros_like(acc_ref)

    acc_ref[...] += jnp.dot(x_ref[...], w_ref[...],
                            preferred_element_type=jnp.float32)

    @pl.when(k == pl.num_programs(2) - 1)
    def _():
        acc = acc_ref[...] + b_ref[...]            # bias in f32
        if activation == "relu":
            acc = jnp.maximum(acc, 0.0)
        o_ref[...] = acc.astype(o_ref.dtype)


def pallas_linear(x, w, b, activation=None, out_dtype=None,
                  tm_max=256, tn_max=512, tk_max=512):
    """y = x @ w + b (optional ReLU).  x:(M,K) bf16, w:(K,N) bf16, b:(N,) f32."""
    M, K = x.shape
    K2, N = w.shape
    assert K == K2
    out_dtype = out_dtype or x.dtype

    tm = _pick_tile(M, tm_max, 8)
    tk = _pick_tile(K, tk_max, 128)
    tn = _pick_tile(N, tn_max, 128)
    Mp, Kp, Np = _round_up(M, tm), _round_up(K, tk), _round_up(N, tn)

    xp = _pad2d(x, Mp, Kp)
    wp = _pad2d(w, Kp, Np)
    bp = jnp.pad(b.astype(jnp.float32), (0, Np - N)).reshape(1, Np)

    grid = (Mp // tm, Np // tn, Kp // tk)
    out = pl.pallas_call(
        partial(_matmul_bias_kernel, activation=activation),
        out_shape=jax.ShapeDtypeStruct((Mp, Np), out_dtype),
        grid_spec=pltpu.PrefetchScalarGridSpec(
            num_scalar_prefetch=0,
            grid=grid,
            in_specs=[
                pl.BlockSpec((tm, tk), lambda i, j, k: (i, k)),
                pl.BlockSpec((tk, tn), lambda i, j, k: (k, j)),
                pl.BlockSpec((1, tn), lambda i, j, k: (0, j)),
            ],
            out_specs=pl.BlockSpec((tm, tn), lambda i, j, k: (i, j)),
            scratch_shapes=[pltpu.VMEM((tm, tn), jnp.float32)],
        ),
        compiler_params=pltpu.CompilerParams(
            dimension_semantics=("parallel", "parallel", "arbitrary")),
    )(xp, wp, bp)

    if (Mp, Np) != (M, N):
        out = out[:M, :N]
    return out


# ----------------------------------------------------------------------------
# Row-tiled residual-add + LayerNorm kernel
# ----------------------------------------------------------------------------
def _add_ln_kernel(x_ref, y_ref, g_ref, b_ref, o_ref):
    z = x_ref[...].astype(jnp.float32) + y_ref[...].astype(jnp.float32)
    mean = jnp.mean(z, axis=-1, keepdims=True)
    var = jnp.mean(jnp.square(z - mean), axis=-1, keepdims=True)
    zn = (z - mean) * jax.lax.rsqrt(var + LN_EPS)
    o_ref[...] = (zn * g_ref[...] + b_ref[...]).astype(o_ref.dtype)


def pallas_add_layernorm(x, y, gamma, beta, tm_max=256, out_dtype=jnp.bfloat16):
    """LayerNorm(x + y) over last axis.  x,y:(M,H)  gamma,beta:(H,) f32."""
    M, H = x.shape
    tm = _pick_tile(M, tm_max, 8)
    Mp = _round_up(M, tm)
    if Mp != M:
        x = jnp.pad(x, ((0, Mp - M), (0, 0)))
        y = jnp.pad(y, ((0, Mp - M), (0, 0)))

    out = pl.pallas_call(
        _add_ln_kernel,
        out_shape=jax.ShapeDtypeStruct((Mp, H), out_dtype),
        grid_spec=pltpu.PrefetchScalarGridSpec(
            num_scalar_prefetch=0,
            grid=(Mp // tm,),
            in_specs=[
                pl.BlockSpec((tm, H), lambda i: (i, 0)),
                pl.BlockSpec((tm, H), lambda i: (i, 0)),
                pl.BlockSpec((1, H), lambda i: (0, 0)),
                pl.BlockSpec((1, H), lambda i: (0, 0)),
            ],
            out_specs=pl.BlockSpec((tm, H), lambda i: (i, 0)),
        ),
        compiler_params=pltpu.CompilerParams(dimension_semantics=("parallel",)),
    )(x, y, gamma.astype(jnp.float32).reshape(1, H),
      beta.astype(jnp.float32).reshape(1, H))

    return out[:M] if Mp != M else out


# ----------------------------------------------------------------------------
# Flash attention (online softmax) kernel
# ----------------------------------------------------------------------------
def _flash_attn_kernel(q_ref, k_ref, v_ref, o_ref, m_sc, l_sc, acc_sc,
                       *, seq_len, kv_tile, masked):
    kv_idx = pl.program_id(2)

    @pl.when(kv_idx == 0)
    def _():
        m_sc[...] = jnp.full_like(m_sc, NEG_INF)
        l_sc[...] = jnp.zeros_like(l_sc)
        acc_sc[...] = jnp.zeros_like(acc_sc)

    q = q_ref[0]        # (tq, D)  bf16, already scaled by 1/sqrt(D)
    k = k_ref[0]        # (tkv, D) bf16
    # scores: q @ k^T  -> (tq, tkv) in f32
    s = jax.lax.dot_general(q, k, (((1,), (1,)), ((), ())),
                            preferred_element_type=jnp.float32)
    if masked:
        col = jax.lax.broadcasted_iota(jnp.int32, s.shape, 1) + kv_idx * kv_tile
        s = jnp.where(col < seq_len, s, NEG_INF)

    m_prev = m_sc[...]
    m_new = jnp.maximum(m_prev, jnp.max(s, axis=-1, keepdims=True))
    alpha = jnp.exp(m_prev - m_new)
    p = jnp.exp(s - m_new)
    l_sc[...] = alpha * l_sc[...] + jnp.sum(p, axis=-1, keepdims=True)
    pv = jax.lax.dot_general(p.astype(v_ref.dtype), v_ref[0],
                             (((1,), (0,)), ((), ())),
                             preferred_element_type=jnp.float32)
    acc_sc[...] = alpha * acc_sc[...] + pv
    m_sc[...] = m_new

    @pl.when(kv_idx == pl.num_programs(2) - 1)
    def _():
        inv_l = pl.reciprocal(l_sc[...], approx=True)
        o_ref[0, :, :] = (acc_sc[...] * inv_l).astype(o_ref.dtype)


def pallas_flash_attention(q, k, v, tile_max=128):
    """softmax(q k^T) v per head.  q,k,v:(B*nh, S, hd) bf16 (q pre-scaled)."""
    BH, S, D = q.shape
    tq = _pick_tile(S, tile_max, 8)
    tkv = tq
    Sp = _round_up(S, tq)
    masked = Sp != S
    if masked:
        pad = ((0, 0), (0, Sp - S), (0, 0))
        q, k, v = jnp.pad(q, pad), jnp.pad(k, pad), jnp.pad(v, pad)

    out = pl.pallas_call(
        partial(_flash_attn_kernel, seq_len=S, kv_tile=tkv, masked=masked),
        out_shape=jax.ShapeDtypeStruct((BH, Sp, D), q.dtype),
        grid_spec=pltpu.PrefetchScalarGridSpec(
            num_scalar_prefetch=0,
            grid=(BH, Sp // tq, Sp // tkv),
            in_specs=[
                pl.BlockSpec((1, tq, D), lambda b, i, j: (b, i, 0)),
                pl.BlockSpec((1, tkv, D), lambda b, i, j: (b, j, 0)),
                pl.BlockSpec((1, tkv, D), lambda b, i, j: (b, j, 0)),
            ],
            out_specs=pl.BlockSpec((1, tq, D), lambda b, i, j: (b, i, 0)),
            scratch_shapes=[
                pltpu.VMEM((tq, 1), jnp.float32),   # running max
                pltpu.VMEM((tq, 1), jnp.float32),   # running sum
                pltpu.VMEM((tq, D), jnp.float32),   # output accumulator
            ],
        ),
        compiler_params=pltpu.CompilerParams(
            dimension_semantics=("parallel", "parallel", "arbitrary")),
    )(q, k, v)

    if masked:
        out = out[:, :S, :]
    return out


# ----------------------------------------------------------------------------
# Parameter initialization (deterministic, synthetic) + one-time prep
# ----------------------------------------------------------------------------
def init_params(key, vocab_size, hidden_size, num_layers, ffn_size, max_seq_len=1000):
    def normal(k, shape, scale=0.02):
        return scale * jax.random.normal(k, shape, dtype=jnp.float32)

    keys = jax.random.split(key, 4 + num_layers)
    embed = normal(keys[0], (vocab_size, hidden_size))
    embed = embed.at[0].set(0.0)                      # padding_idx=0 row is zero
    pos_embed = normal(keys[1], (max_seq_len, hidden_size))

    params = {
        "embed": embed,
        "pos_embed": pos_embed,
        "pos_norm_g": jnp.ones((hidden_size,), jnp.float32),
        "pos_norm_b": jnp.zeros((hidden_size,), jnp.float32),
        "logits_w": normal(keys[2], (hidden_size, vocab_size)),
        "logits_b": jnp.zeros((vocab_size,), jnp.float32),
        "layers": [],
    }
    for l in range(num_layers):
        lk = jax.random.split(keys[4 + l], 4)
        params["layers"].append({
            "in_proj_w": normal(lk[0], (hidden_size, 3 * hidden_size)),
            "in_proj_b": jnp.zeros((3 * hidden_size,), jnp.float32),
            "out_proj_w": normal(lk[1], (hidden_size, hidden_size)),
            "out_proj_b": jnp.zeros((hidden_size,), jnp.float32),
            "norm1_g": jnp.ones((hidden_size,), jnp.float32),
            "norm1_b": jnp.zeros((hidden_size,), jnp.float32),
            "lin1_w": normal(lk[2], (hidden_size, ffn_size)),
            "lin1_b": jnp.zeros((ffn_size,), jnp.float32),
            "lin2_w": normal(lk[3], (ffn_size, hidden_size)),
            "lin2_b": jnp.zeros((hidden_size,), jnp.float32),
            "norm2_g": jnp.ones((hidden_size,), jnp.float32),
            "norm2_b": jnp.zeros((hidden_size,), jnp.float32),
        })
    return params


def prepare_params(params, num_head):
    """One-time prep: cast MXU weights to bf16 and fold the 1/sqrt(hd)
    attention scale into the Q columns of in_proj (weight + bias)."""
    H = params["embed"].shape[1]
    hd = H // num_head
    scale = 1.0 / math.sqrt(hd)
    bf16 = lambda a: a.astype(jnp.bfloat16)

    prepped = {
        "embed": bf16(params["embed"]),
        "pos_embed": bf16(params["pos_embed"]),
        "pos_norm_g": params["pos_norm_g"],
        "pos_norm_b": params["pos_norm_b"],
        "logits_w": bf16(params["logits_w"]),
        "logits_b": params["logits_b"],
        "layers": [],
    }
    for layer in params["layers"]:
        w_in = layer["in_proj_w"]
        w_in = jnp.concatenate([w_in[:, :H] * scale, w_in[:, H:]], axis=1)
        b_in = layer["in_proj_b"]
        b_in = jnp.concatenate([b_in[:H] * scale, b_in[H:]])
        prepped["layers"].append({
            "in_proj_w": bf16(w_in), "in_proj_b": b_in,
            "out_proj_w": bf16(layer["out_proj_w"]), "out_proj_b": layer["out_proj_b"],
            "norm1_g": layer["norm1_g"], "norm1_b": layer["norm1_b"],
            "lin1_w": bf16(layer["lin1_w"]), "lin1_b": layer["lin1_b"],
            "lin2_w": bf16(layer["lin2_w"]), "lin2_b": layer["lin2_b"],
            "norm2_g": layer["norm2_g"], "norm2_b": layer["norm2_b"],
        })
    return prepped


# ----------------------------------------------------------------------------
# Forward pass (matches BERT.forward / get_embeddings, post-norm encoder, eval)
# ----------------------------------------------------------------------------
def bert_forward(params, tokens, masked_ind, num_head):
    B, S = tokens.shape
    H = params["embed"].shape[1]
    hd = H // num_head

    # token embedding + positional embedding + LayerNorm (PositionalEncoder)
    emb = jnp.take(params["embed"], tokens, axis=0)                   # (B,S,H) bf16
    pos = jnp.broadcast_to(params["pos_embed"][:S][None], (B, S, H))
    h = pallas_add_layernorm(emb.reshape(B * S, H), pos.reshape(B * S, H),
                             params["pos_norm_g"], params["pos_norm_b"])

    def to_heads(t):      # (B*S, H) -> (B*nh, S, hd)
        return t.reshape(B, S, num_head, hd).transpose(0, 2, 1, 3).reshape(B * num_head, S, hd)

    def from_heads(t):    # (B*nh, S, hd) -> (B*S, H)
        return t.reshape(B, num_head, S, hd).transpose(0, 2, 1, 3).reshape(B * S, H)

    # TransformerEncoder: post-norm layers, ReLU FFN.
    # TODO(synk): dropout layers are treated as identity (eval-mode semantics).
    # TODO(synk): head split/merge transposes are still XLA-side copies; fully
    #   removing them needs a head-batched attention / head-reduction out_proj
    #   kernel (batched dot with non-leading batch dims), left for a follow-up.
    # TODO(synk): residual-add + LayerNorm could be fused into the out_proj /
    #   lin2 matmul epilogue (pl.when last-k) to save one activation round-trip.
    for layer in params["layers"]:
        qkv = pallas_linear(h, layer["in_proj_w"], layer["in_proj_b"])   # (BS,3H) bf16
        q, k, v = qkv[:, :H], qkv[:, H:2 * H], qkv[:, 2 * H:]
        attn = pallas_flash_attention(to_heads(q), to_heads(k), to_heads(v))
        attn = pallas_linear(from_heads(attn), layer["out_proj_w"], layer["out_proj_b"])
        h = pallas_add_layernorm(h, attn, layer["norm1_g"], layer["norm1_b"])

        ff = pallas_linear(h, layer["lin1_w"], layer["lin1_b"], activation="relu")
        ff = pallas_linear(ff, layer["lin2_w"], layer["lin2_b"])
        h = pallas_add_layernorm(h, ff, layer["norm2_g"], layer["norm2_b"])

    res = h.reshape(B, S, H)

    # per-sequence index_select of masked positions, then vocab projection
    masked = jnp.take_along_axis(res, masked_ind[:, :, None], axis=1)    # (B,n_mask,H)
    n_mask = masked_ind.shape[1]
    logits = pallas_linear(masked.reshape(B * n_mask, H),
                           params["logits_w"], params["logits_b"],
                           out_dtype=jnp.float32)
    vocab = params["logits_w"].shape[1]
    return logits.reshape(B, n_mask, vocab)


# ----------------------------------------------------------------------------
if __name__ == "__main__":
    # Small, module-consistent shapes.
    VOCAB = 64
    HIDDEN = 64
    NUM_HEAD = 8
    NUM_LAYERS = 2
    FFN = 2048          # nn.TransformerEncoderLayer default dim_feedforward
    B, S, N_MASK = 2, 8, 2

    root = jax.random.PRNGKey(0)
    k_par, k_tok, k_msk = jax.random.split(root, 3)

    params = init_params(k_par, VOCAB, HIDDEN, NUM_LAYERS, FFN)
    params = prepare_params(params, NUM_HEAD)
    tokens = jax.random.randint(k_tok, (B, S), minval=1, maxval=VOCAB, dtype=jnp.int32)
    masked_ind = jax.random.randint(k_msk, (B, N_MASK), minval=0, maxval=S, dtype=jnp.int32)

    logits = jax.jit(bert_forward, static_argnums=(3,))(params, tokens, masked_ind, NUM_HEAD)
    jax.block_until_ready(logits)

    assert logits.shape == (B, N_MASK, VOCAB)
    assert bool(jnp.all(jnp.isfinite(logits)))
    print("KERNEL_OK")
</pallas_src>

<mosaic_0001>
module attributes {stable_mosaic.version = 11 : i64} {
  func.func @_add_ln_kernel(%arg0: i32, %arg1: memref<16x64xbf16, #tpu.memory_space<vmem>>, %arg2: memref<16x64xbf16, #tpu.memory_space<vmem>>, %arg3: memref<1x64xf32, #tpu.memory_space<vmem>>, %arg4: memref<1x64xf32, #tpu.memory_space<vmem>>, %arg5: memref<16x64xbf16, #tpu.memory_space<vmem>>) attributes {dimension_semantics = [#tpu.dimension_semantics<parallel>], iteration_bounds = array<i64: 1>, scalar_prefetch = 0 : i64, scratch_operands = 0 : i64, tpu.core_type = #tpu.core_type<tc>, window_params = [{transform_indices = @transform_0, window_bounds = array<i64: 16, 64>}, {transform_indices = @transform_1, window_bounds = array<i64: 16, 64>}, {pipeline_mode = #tpu.pipeline_mode<synchronous>, transform_indices = @transform_2, window_bounds = array<i64: 1, 64>}, {pipeline_mode = #tpu.pipeline_mode<synchronous>, transform_indices = @transform_3, window_bounds = array<i64: 1, 64>}, {transform_indices = @transform_4, window_bounds = array<i64: 16, 64>}]} {
    %c0 = arith.constant 0 : index
    %c0_0 = arith.constant 0 : index
    %0 = vector.load %arg1[%c0, %c0_0] : memref<16x64xbf16, #tpu.memory_space<vmem>>, vector<16x64xbf16>
    %1 = arith.extf %0 : vector<16x64xbf16> to vector<16x64xf32>
    %c0_1 = arith.constant 0 : index
    %c0_2 = arith.constant 0 : index
    %2 = vector.load %arg2[%c0_1, %c0_2] : memref<16x64xbf16, #tpu.memory_space<vmem>>, vector<16x64xbf16>
    %3 = arith.extf %2 : vector<16x64xbf16> to vector<16x64xf32>
    %4 = arith.addf %1, %3 : vector<16x64xf32>
    %cst = arith.constant dense<0.000000e+00> : vector<16xf32>
    %5 = vector.multi_reduction <add>, %4, %cst [1] : vector<16x64xf32> to vector<16xf32>
    %6 = vector.shape_cast %5 : vector<16xf32> to vector<16x1xf32>
    %cst_3 = arith.constant 6.400000e+01 : f32
    %7 = vector.broadcast %cst_3 : f32 to vector<16x1xf32>
    %8 = arith.divf %6, %7 : vector<16x1xf32>
    %9 = vector.broadcast %8 : vector<16x1xf32> to vector<16x64xf32>
    %10 = arith.subf %4, %9 : vector<16x64xf32>
    %11 = arith.mulf %10, %10 : vector<16x64xf32>
    %cst_4 = arith.constant dense<0.000000e+00> : vector<16xf32>
    %12 = vector.multi_reduction <add>, %11, %cst_4 [1] : vector<16x64xf32> to vector<16xf32>
    %13 = vector.shape_cast %12 : vector<16xf32> to vector<16x1xf32>
    %cst_5 = arith.constant 6.400000e+01 : f32
    %14 = vector.broadcast %cst_5 : f32 to vector<16x1xf32>
    %15 = arith.divf %13, %14 : vector<16x1xf32>
    %16 = vector.broadcast %8 : vector<16x1xf32> to vector<16x64xf32>
    %17 = arith.subf %4, %16 : vector<16x64xf32>
    %cst_6 = arith.constant 9.99999974E-6 : f32
    %18 = vector.broadcast %cst_6 : f32 to vector<16x1xf32>
    %19 = arith.addf %15, %18 : vector<16x1xf32>
    %20 = math.rsqrt %19 : vector<16x1xf32>
    %21 = vector.broadcast %20 : vector<16x1xf32> to vector<16x64xf32>
    %22 = arith.mulf %17, %21 : vector<16x64xf32>
    %c0_7 = arith.constant 0 : index
    %c0_8 = arith.constant 0 : index
    %23 = vector.load %arg3[%c0_7, %c0_8] : memref<1x64xf32, #tpu.memory_space<vmem>>, vector<1x64xf32>
    %24 = vector.broadcast %23 : vector<1x64xf32> to vector<16x64xf32>
    %25 = arith.mulf %22, %24 : vector<16x64xf32>
    %c0_9 = arith.constant 0 : index
    %c0_10 = arith.constant 0 : index
    %26 = vector.load %arg4[%c0_9, %c0_10] : memref<1x64xf32, #tpu.memory_space<vmem>>, vector<1x64xf32>
    %27 = vector.broadcast %26 : vector<1x64xf32> to vector<16x64xf32>
    %28 = arith.addf %25, %27 : vector<16x64xf32>
    %29 = arith.truncf %28 : vector<16x64xf32> to vector<16x64xbf16>
    %c0_11 = arith.constant 0 : index
    %c0_12 = arith.constant 0 : index
    %30 = vector.load %arg5[%c0_11, %c0_12] : memref<16x64xbf16, #tpu.memory_space<vmem>>, vector<16x64xbf16>
    tpu.vector_store %arg5[%c0_11, %c0_12], %29 {strides = array<i32>} : memref<16x64xbf16, #tpu.memory_space<vmem>>, vector<16x64xbf16>,
    return
  }
  func.func @transform_0(%arg0: i32) -> (i32, i32) {
    %c0_i32 = arith.constant 0 : i32
    %c0_i32_0 = arith.constant 0 : i32
    return %arg0, %c0_i32 : i32, i32
  }
  func.func @transform_1(%arg0: i32) -> (i32, i32) {
    %c0_i32 = arith.constant 0 : i32
    %c0_i32_0 = arith.constant 0 : i32
    return %arg0, %c0_i32 : i32, i32
  }
  func.func @transform_2(%arg0: i32) -> (i32, i32) {
    %c0_i32 = arith.constant 0 : i32
    %c0_i32_0 = arith.constant 0 : i32
    %c0_i32_1 = arith.constant 0 : i32
    return %c0_i32, %c0_i32_0 : i32, i32
  }
  func.func @transform_3(%arg0: i32) -> (i32, i32) {
    %c0_i32 = arith.constant 0 : i32
    %c0_i32_0 = arith.constant 0 : i32
    %c0_i32_1 = arith.constant 0 : i32
    return %c0_i32, %c0_i32_0 : i32, i32
  }
  func.func @transform_4(%arg0: i32) -> (i32, i32) {
    %c0_i32 = arith.constant 0 : i32
    %c0_i32_0 = arith.constant 0 : i32
    return %arg0, %c0_i32 : i32, i32
  }
}

module attributes {stable_mosaic.version = 11 : i64} {
  func.func @_matmul_bias_kernel(%arg0: i32, %arg1: i32, %arg2: i32, %arg3: memref<16x128xbf16, #tpu.memory_space<vmem>>, %arg4: memref<128x256xbf16, #tpu.memory_space<vmem>>, %arg5: memref<1x256xf32, #tpu.memory_space<vmem>>, %arg6: memref<16x256xbf16, #tpu.memory_space<vmem>>, %arg7: memref<16x256xf32, #tpu.memory_space<vmem>>) attributes {dimension_semantics = [#tpu.dimension_semantics<parallel>, #tpu.dimension_semantics<parallel>, #tpu.dimension_semantics<arbitrary>], iteration_bounds = array<i64: 1, 1, 1>, scalar_prefetch = 0 : i64, scratch_operands = 1 : i64, tpu.core_type = #tpu.core_type<tc>, window_params = [{transform_indices = @transform_0, window_bounds = array<i64: 16, 128>}, {transform_indices = @transform_1, window_bounds = array<i64: 128, 256>}, {transform_indices = @transform_2, window_bounds = array<i64: 1, 256>}, {transform_indices = @transform_3, window_bounds = array<i64: 16, 256>}]} {
    %c0_i32 = arith.constant 0 : i32
    %0 = arith.cmpi eq, %arg2, %c0_i32 : i32
    %1 = arith.extui %0 : i1 to i32
    %c0_i32_0 = arith.constant 0 : i32
    %2 = arith.cmpi ne, %1, %c0_i32_0 : i32
    scf.if %2 {
      %cst_10 = arith.constant 0.000000e+00 : f32
      %12 = vector.broadcast %cst_10 : f32 to vector<16x256xf32>
      %c0_11 = arith.constant 0 : index
      %c0_12 = arith.constant 0 : index
      %13 = vector.load %arg7[%c0_11, %c0_12] : memref<16x256xf32, #tpu.memory_space<vmem>>, vector<16x256xf32>
      tpu.vector_store %arg7[%c0_11, %c0_12], %12 {strides = array<i32>} : memref<16x256xf32, #tpu.memory_space<vmem>>, vector<16x256xf32>,
    } else {
    }
    %c0 = arith.constant 0 : index
    %c0_1 = arith.constant 0 : index
    %3 = vector.load %arg7[%c0, %c0_1] : memref<16x256xf32, #tpu.memory_space<vmem>>, vector<16x256xf32>
    %c0_2 = arith.constant 0 : index
    %c0_3 = arith.constant 0 : index
    %4 = vector.load %arg3[%c0_2, %c0_3] : memref<16x128xbf16, #tpu.memory_space<vmem>>, vector<16x128xbf16>
    %c0_4 = arith.constant 0 : index
    %c0_5 = arith.constant 0 : index
    %5 = vector.load %arg4[%c0_4, %c0_5] : memref<128x256xbf16, #tpu.memory_space<vmem>>, vector<128x256xbf16>
    %cst = arith.constant dense<0.000000e+00> : vector<16x256xf32>
    %6 = tpu.matmul %4, %5, %cst {dimension_numbers = #tpu.dot_dimension_numbers<[1], [0], [0], [1], [0, 0, 1, 1], [], []>} : vector<16x128xbf16>, vector<128x256xbf16>, vector<16x256xf32> -> vector<16x256xf32>
    %7 = arith.addf %3, %6 : vector<16x256xf32>
    %c0_6 = arith.constant 0 : index
    %c0_7 = arith.constant 0 : index
    %8 = vector.load %arg7[%c0_6, %c0_7] : memref<16x256xf32, #tpu.memory_space<vmem>>, vector<16x256xf32>
    tpu.vector_store %arg7[%c0_6, %c0_7], %7 {strides = array<i32>} : memref<16x256xf32, #tpu.memory_space<vmem>>, vector<16x256xf32>,
    %c0_i32_8 = arith.constant 0 : i32
    %9 = arith.cmpi eq, %arg2, %c0_i32_8 : i32
    %10 = arith.extui %9 : i1 to i32
    %c0_i32_9 = arith.constant 0 : i32
    %11 = arith.cmpi ne, %10, %c0_i32_9 : i32
    scf.if %11 {
      %c0_10 = arith.constant 0 : index
      %c0_11 = arith.constant 0 : index
      %12 = vector.load %arg7[%c0_10, %c0_11] : memref<16x256xf32, #tpu.memory_space<vmem>>, vector<16x256xf32>
      %c0_12 = arith.constant 0 : index
      %c0_13 = arith.constant 0 : index
      %13 = vector.load %arg5[%c0_12, %c0_13] : memref<1x256xf32, #tpu.memory_space<vmem>>, vector<1x256xf32>
      %14 = vector.broadcast %13 : vector<1x256xf32> to vector<16x256xf32>
      %15 = arith.addf %12, %14 : vector<16x256xf32>
      %16 = arith.truncf %15 : vector<16x256xf32> to vector<16x256xbf16>
      %c0_14 = arith.constant 0 : index
      %c0_15 = arith.constant 0 : index
      %17 = vector.load %arg6[%c0_14, %c0_15] : memref<16x256xbf16, #tpu.memory_space<vmem>>, vector<16x256xbf16>
      tpu.vector_store %arg6[%c0_14, %c0_15], %16 {strides = array<i32>} : memref<16x256xbf16, #tpu.memory_space<vmem>>, vector<16x256xbf16>,
    } else {
    }
    return
  }
  func.func @transform_0(%arg0: i32, %arg1: i32, %arg2: i32) -> (i32, i32) {
    %c0_i32 = arith.constant 0 : i32
    return %arg0, %arg2 : i32, i32
  }
  func.func @transform_1(%arg0: i32, %arg1: i32, %arg2: i32) -> (i32, i32) {
    %c0_i32 = arith.constant 0 : i32
    return %arg2, %arg1 : i32, i32
  }
  func.func @transform_2(%arg0: i32, %arg1: i32, %arg2: i32) -> (i32, i32) {
    %c0_i32 = arith.constant 0 : i32
    %c0_i32_0 = arith.constant 0 : i32
    return %c0_i32, %arg1 : i32, i32
  }
  func.func @transform_3(%arg0: i32, %arg1: i32, %arg2: i32) -> (i32, i32) {
    %c0_i32 = arith.constant 0 : i32
    return %arg0, %arg1 : i32, i32
  }
}

module attributes {stable_mosaic.version = 11 : i64} {
  func.func @_flash_attn_kernel(%arg0: i32, %arg1: i32, %arg2: i32, %arg3: memref<1x8x8xbf16, #tpu.memory_space<vmem>>, %arg4: memref<1x8x8xbf16, #tpu.memory_space<vmem>>, %arg5: memref<1x8x8xbf16, #tpu.memory_space<vmem>>, %arg6: memref<1x8x8xbf16, #tpu.memory_space<vmem>>, %arg7: memref<8x1xf32, #tpu.memory_space<vmem>>, %arg8: memref<8x1xf32, #tpu.memory_space<vmem>>, %arg9: memref<8x8xf32, #tpu.memory_space<vmem>>) attributes {dimension_semantics = [#tpu.dimension_semantics<parallel>, #tpu.dimension_semantics<parallel>, #tpu.dimension_semantics<arbitrary>], iteration_bounds = array<i64: 16, 1, 1>, scalar_prefetch = 0 : i64, scratch_operands = 3 : i64, tpu.core_type = #tpu.core_type<tc>, window_params = [{transform_indices = @transform_0, window_bounds = array<i64: 1, 8, 8>}, {transform_indices = @transform_1, window_bounds = array<i64: 1, 8, 8>}, {transform_indices = @transform_2, window_bounds = array<i64: 1, 8, 8>}, {transform_indices = @transform_3, window_bounds = array<i64: 1, 8, 8>}]} {
    %c0_i32 = arith.constant 0 : i32
    %0 = arith.cmpi eq, %arg2, %c0_i32 : i32
    %1 = arith.extui %0 : i1 to i32
    %c0_i32_0 = arith.constant 0 : i32
    %2 = arith.cmpi ne, %1, %c0_i32_0 : i32
    scf.if %2 {
      %cst_26 = arith.constant -1.000000e+30 : f32
      %36 = vector.broadcast %cst_26 : f32 to vector<8x1xf32>
      %c0_27 = arith.constant 0 : index
      %c0_28 = arith.constant 0 : index
      %37 = vector.load %arg7[%c0_27, %c0_28] : memref<8x1xf32, #tpu.memory_space<vmem>>, vector<8x1xf32>
      tpu.vector_store %arg7[%c0_27, %c0_28], %36 {strides = array<i32>} : memref<8x1xf32, #tpu.memory_space<vmem>>, vector<8x1xf32>,
      %cst_29 = arith.constant 0.000000e+00 : f32
      %38 = vector.broadcast %cst_29 : f32 to vector<8x1xf32>
      %c0_30 = arith.constant 0 : index
      %c0_31 = arith.constant 0 : index
      %39 = vector.load %arg8[%c0_30, %c0_31] : memref<8x1xf32, #tpu.memory_space<vmem>>, vector<8x1xf32>
      tpu.vector_store %arg8[%c0_30, %c0_31], %38 {strides = array<i32>} : memref<8x1xf32, #tpu.memory_space<vmem>>, vector<8x1xf32>,
      %cst_32 = arith.constant 0.000000e+00 : f32
      %40 = vector.broadcast %cst_32 : f32 to vector<8x8xf32>
      %c0_33 = arith.constant 0 : index
      %c0_34 = arith.constant 0 : index
      %41 = vector.load %arg9[%c0_33, %c0_34] : memref<8x8xf32, #tpu.memory_space<vmem>>, vector<8x8xf32>
      tpu.vector_store %arg9[%c0_33, %c0_34], %40 {strides = array<i32>} : memref<8x8xf32, #tpu.memory_space<vmem>>, vector<8x8xf32>,
    } else {
    }
    %c0 = arith.constant 0 : index
    %c0_1 = arith.constant 0 : index
    %c0_2 = arith.constant 0 : index
    %3 = vector.load %arg3[%c0, %c0_1, %c0_2] : memref<1x8x8xbf16, #tpu.memory_space<vmem>>, vector<1x8x8xbf16>
    %4 = vector.shape_cast %3 : vector<1x8x8xbf16> to vector<8x8xbf16>
    %c0_3 = arith.constant 0 : index
    %c0_4 = arith.constant 0 : index
    %c0_5 = arith.constant 0 : index
    %5 = vector.load %arg4[%c0_3, %c0_4, %c0_5] : memref<1x8x8xbf16, #tpu.memory_space<vmem>>, vector<1x8x8xbf16>
    %6 = vector.shape_cast %5 : vector<1x8x8xbf16> to vector<8x8xbf16>
    %cst = arith.constant dense<0.000000e+00> : vector<8x8xf32>
    %7 = tpu.matmul %4, %6, %cst {dimension_numbers = #tpu.dot_dimension_numbers<[1], [1], [0], [0], [0, 0, 1, 0], [], []>} : vector<8x8xbf16>, vector<8x8xbf16>, vector<8x8xf32> -> vector<8x8xf32>
    %c0_6 = arith.constant 0 : index
    %c0_7 = arith.constant 0 : index
    %8 = vector.load %arg7[%c0_6, %c0_7] : memref<8x1xf32, #tpu.memory_space<vmem>>, vector<8x1xf32>
    %cst_8 = arith.constant dense<0xFF800000> : vector<8xf32>
    %9 = vector.multi_reduction <maximumf>, %7, %cst_8 [1] : vector<8x8xf32> to vector<8xf32>
    %10 = vector.shape_cast %9 : vector<8xf32> to vector<8x1xf32>
    %11 = arith.maximumf %8, %10 : vector<8x1xf32>
    %12 = arith.subf %8, %11 : vector<8x1xf32>
    %13 = math.exp %12 : vector<8x1xf32>
    %14 = vector.broadcast %11 : vector<8x1xf32> to vector<8x8xf32>
    %15 = arith.subf %7, %14 : vector<8x8xf32>
    %16 = math.exp %15 : vector<8x8xf32>
    %c0_9 = arith.constant 0 : index
    %c0_10 = arith.constant 0 : index
    %17 = vector.load %arg8[%c0_9, %c0_10] : memref<8x1xf32, #tpu.memory_space<vmem>>, vector<8x1xf32>
    %18 = arith.mulf %13, %17 : vector<8x1xf32>
    %cst_11 = arith.constant dense<0.000000e+00> : vector<8xf32>
    %19 = vector.multi_reduction <add>, %16, %cst_11 [1] : vector<8x8xf32> to vector<8xf32>
    %20 = vector.shape_cast %19 : vector<8xf32> to vector<8x1xf32>
    %21 = arith.addf %18, %20 : vector<8x1xf32>
    %c0_12 = arith.constant 0 : index
    %c0_13 = arith.constant 0 : index
    %22 = vector.load %arg8[%c0_12, %c0_13] : memref<8x1xf32, #tpu.memory_space<vmem>>, vector<8x1xf32>
    tpu.vector_store %arg8[%c0_12, %c0_13], %21 {strides = array<i32>} : memref<8x1xf32, #tpu.memory_space<vmem>>, vector<8x1xf32>,
    %23 = arith.truncf %16 : vector<8x8xf32> to vector<8x8xbf16>
    %c0_14 = arith.constant 0 : index
    %c0_15 = arith.constant 0 : index
    %c0_16 = arith.constant 0 : index
    %24 = vector.load %arg5[%c0_14, %c0_15, %c0_16] : memref<1x8x8xbf16, #tpu.memory_space<vmem>>, vector<1x8x8xbf16>
    %25 = vector.shape_cast %24 : vector<1x8x8xbf16> to vector<8x8xbf16>
    %cst_17 = arith.constant dense<0.000000e+00> : vector<8x8xf32>
    %26 = tpu.matmul %23, %25, %cst_17 {dimension_numbers = #tpu.dot_dimension_numbers<[1], [0], [0], [1], [0, 0, 1, 1], [], []>} : vector<8x8xbf16>, vector<8x8xbf16>, vector<8x8xf32> -> vector<8x8xf32>
    %c0_18 = arith.constant 0 : index
    %c0_19 = arith.constant 0 : index
    %27 = vector.load %arg9[%c0_18, %c0_19] : memref<8x8xf32, #tpu.memory_space<vmem>>, vector<8x8xf32>
    %28 = vector.broadcast %13 : vector<8x1xf32> to vector<8x8xf32>
    %29 = arith.mulf %28, %27 : vector<8x8xf32>
    %30 = arith.addf %29, %26 : vector<8x8xf32>
    %c0_20 = arith.constant 0 : index
    %c0_21 = arith.constant 0 : index
    %31 = vector.load %arg9[%c0_20, %c0_21] : memref<8x8xf32, #tpu.memory_space<vmem>>, vector<8x8xf32>
    tpu.vector_store %arg9[%c0_20, %c0_21], %30 {strides = array<i32>} : memref<8x8xf32, #tpu.memory_space<vmem>>, vector<8x8xf32>,
    %c0_22 = arith.constant 0 : index
    %c0_23 = arith.constant 0 : index
    %32 = vector.load %arg7[%c0_22, %c0_23] : memref<8x1xf32, #tpu.memory_space<vmem>>, vector<8x1xf32>
    tpu.vector_store %arg7[%c0_22, %c0_23], %11 {strides = array<i32>} : memref<8x1xf32, #tpu.memory_space<vmem>>, vector<8x1xf32>,
    %c0_i32_24 = arith.constant 0 : i32
    %33 = arith.cmpi eq, %arg2, %c0_i32_24 : i32
    %34 = arith.extui %33 : i1 to i32
    %c0_i32_25 = arith.constant 0 : i32
    %35 = arith.cmpi ne, %34, %c0_i32_25 : i32
    scf.if %35 {
      %c0_26 = arith.constant 0 : index
      %c0_27 = arith.constant 0 : index
      %36 = vector.load %arg8[%c0_26, %c0_27] : memref<8x1xf32, #tpu.memory_space<vmem>>, vector<8x1xf32>
      %37 = tpu.reciprocal %36 {approx = true} : vector<8x1xf32> -> vector<8x1xf32>
      %c0_28 = arith.constant 0 : index
      %c0_29 = arith.constant 0 : index
      %38 = vector.load %arg9[%c0_28, %c0_29] : memref<8x8xf32, #tpu.memory_space<vmem>>, vector<8x8xf32>
      %39 = vector.broadcast %37 : vector<8x1xf32> to vector<8x8xf32>
      %40 = arith.mulf %38, %39 : vector<8x8xf32>
      %41 = arith.truncf %40 : vector<8x8xf32> to vector<8x8xbf16>
      %c0_30 = arith.constant 0 : index
      %c0_31 = arith.constant 0 : index
      %c0_32 = arith.constant 0 : index
      %42 = vector.load %arg6[%c0_30, %c0_31, %c0_32] : memref<1x8x8xbf16, #tpu.memory_space<vmem>>, vector<1x8x8xbf16>
      %43 = vector.shape_cast %42 : vector<1x8x8xbf16> to vector<8x8xbf16>
      %44 = vector.shape_cast %41 : vector<8x8xbf16> to vector<1x8x8xbf16>
      tpu.vector_store %arg6[%c0_30, %c0_31, %c0_32], %44 {strides = array<i32>} : memref<1x8x8xbf16, #tpu.memory_space<vmem>>, vector<1x8x8xbf16>,
    } else {
    }
    return
  }
  func.func @transform_0(%arg0: i32, %arg1: i32, %arg2: i32) -> (i32, i32, i32) {
    %c0_i32 = arith.constant 0 : i32
    %c0_i32_0 = arith.constant 0 : i32
    return %arg0, %arg1, %c0_i32 : i32, i32, i32
  }
  func.func @transform_1(%arg0: i32, %arg1: i32, %arg2: i32) -> (i32, i32, i32) {
    %c0_i32 = arith.constant 0 : i32
    %c0_i32_0 = arith.constant 0 : i32
    return %arg0, %arg2, %c0_i32 : i32, i32, i32
  }
  func.func @transform_2(%arg0: i32, %arg1: i32, %arg2: i32) -> (i32, i32, i32) {
    %c0_i32 = arith.constant 0 : i32
    %c0_i32_0 = arith.constant 0 : i32
    return %arg0, %arg2, %c0_i32 : i32, i32, i32
  }
  func.func @transform_3(%arg0: i32, %arg1: i32, %arg2: i32) -> (i32, i32, i32) {
    %c0_i32 = arith.constant 0 : i32
    %c0_i32_0 = arith.constant 0 : i32
    return %arg0, %arg1, %c0_i32 : i32, i32, i32
  }
}

module attributes {stable_mosaic.version = 11 : i64} {
  func.func @_matmul_bias_kernel(%arg0: i32, %arg1: i32, %arg2: i32, %arg3: memref<16x128xbf16, #tpu.memory_space<vmem>>, %arg4: memref<128x128xbf16, #tpu.memory_space<vmem>>, %arg5: memref<1x128xf32, #tpu.memory_space<vmem>>, %arg6: memref<16x128xbf16, #tpu.memory_space<vmem>>, %arg7: memref<16x128xf32, #tpu.memory_space<vmem>>) attributes {dimension_semantics = [#tpu.dimension_semantics<parallel>, #tpu.dimension_semantics<parallel>, #tpu.dimension_semantics<arbitrary>], iteration_bounds = array<i64: 1, 1, 1>, scalar_prefetch = 0 : i64, scratch_operands = 1 : i64, tpu.core_type = #tpu.core_type<tc>, window_params = [{transform_indices = @transform_0, window_bounds = array<i64: 16, 128>}, {transform_indices = @transform_1, window_bounds = array<i64: 128, 128>}, {transform_indices = @transform_2, window_bounds = array<i64: 1, 128>}, {transform_indices = @transform_3, window_bounds = array<i64: 16, 128>}]} {
    %c0_i32 = arith.constant 0 : i32
    %0 = arith.cmpi eq, %arg2, %c0_i32 : i32
    %1 = arith.extui %0 : i1 to i32
    %c0_i32_0 = arith.constant 0 : i32
    %2 = arith.cmpi ne, %1, %c0_i32_0 : i32
    scf.if %2 {
      %cst_10 = arith.constant 0.000000e+00 : f32
      %12 = vector.broadcast %cst_10 : f32 to vector<16x128xf32>
      %c0_11 = arith.constant 0 : index
      %c0_12 = arith.constant 0 : index
      %13 = vector.load %arg7[%c0_11, %c0_12] : memref<16x128xf32, #tpu.memory_space<vmem>>, vector<16x128xf32>
      tpu.vector_store %arg7[%c0_11, %c0_12], %12 {strides = array<i32>} : memref<16x128xf32, #tpu.memory_space<vmem>>, vector<16x128xf32>,
    } else {
    }
    %c0 = arith.constant 0 : index
    %c0_1 = arith.constant 0 : index
    %3 = vector.load %arg7[%c0, %c0_1] : memref<16x128xf32, #tpu.memory_space<vmem>>, vector<16x128xf32>
    %c0_2 = arith.constant 0 : index
    %c0_3 = arith.constant 0 : index
    %4 = vector.load %arg3[%c0_2, %c0_3] : memref<16x128xbf16, #tpu.memory_space<vmem>>, vector<16x128xbf16>
    %c0_4 = arith.constant 0 : index
    %c0_5 = arith.constant 0 : index
    %5 = vector.load %arg4[%c0_4, %c0_5] : memref<128x128xbf16, #tpu.memory_space<vmem>>, vector<128x128xbf16>
    %cst = arith.constant dense<0.000000e+00> : vector<16x128xf32>
    %6 = tpu.matmul %4, %5, %cst {dimension_numbers = #tpu.dot_dimension_numbers<[1], [0], [0], [1], [0, 0, 1, 1], [], []>} : vector<16x128xbf16>, vector<128x128xbf16>, vector<16x128xf32> -> vector<16x128xf32>
    %7 = arith.addf %3, %6 : vector<16x128xf32>
    %c0_6 = arith.constant 0 : index
    %c0_7 = arith.constant 0 : index
    %8 = vector.load %arg7[%c0_6, %c0_7] : memref<16x128xf32, #tpu.memory_space<vmem>>, vector<16x128xf32>
    tpu.vector_store %arg7[%c0_6, %c0_7], %7 {strides = array<i32>} : memref<16x128xf32, #tpu.memory_space<vmem>>, vector<16x128xf32>,
    %c0_i32_8 = arith.constant 0 : i32
    %9 = arith.cmpi eq, %arg2, %c0_i32_8 : i32
    %10 = arith.extui %9 : i1 to i32
    %c0_i32_9 = arith.constant 0 : i32
    %11 = arith.cmpi ne, %10, %c0_i32_9 : i32
    scf.if %11 {
      %c0_10 = arith.constant 0 : index
      %c0_11 = arith.constant 0 : index
      %12 = vector.load %arg7[%c0_10, %c0_11] : memref<16x128xf32, #tpu.memory_space<vmem>>, vector<16x128xf32>
      %c0_12 = arith.constant 0 : index
      %c0_13 = arith.constant 0 : index
      %13 = vector.load %arg5[%c0_12, %c0_13] : memref<1x128xf32, #tpu.memory_space<vmem>>, vector<1x128xf32>
      %14 = vector.broadcast %13 : vector<1x128xf32> to vector<16x128xf32>
      %15 = arith.addf %12, %14 : vector<16x128xf32>
      %16 = arith.truncf %15 : vector<16x128xf32> to vector<16x128xbf16>
      %c0_14 = arith.constant 0 : index
      %c0_15 = arith.constant 0 : index
      %17 = vector.load %arg6[%c0_14, %c0_15] : memref<16x128xbf16, #tpu.memory_space<vmem>>, vector<16x128xbf16>
      tpu.vector_store %arg6[%c0_14, %c0_15], %16 {strides = array<i32>} : memref<16x128xbf16, #tpu.memory_space<vmem>>, vector<16x128xbf16>,
    } else {
    }
    return
  }
  func.func @transform_0(%arg0: i32, %arg1: i32, %arg2: i32) -> (i32, i32) {
    %c0_i32 = arith.constant 0 : i32
    return %arg0, %arg2 : i32, i32
  }
  func.func @transform_1(%arg0: i32, %arg1: i32, %arg2: i32) -> (i32, i32) {
    %c0_i32 = arith.constant 0 : i32
    return %arg2, %arg1 : i32, i32
  }
  func.func @transform_2(%arg0: i32, %arg1: i32, %arg2: i32) -> (i32, i32) {
    %c0_i32 = arith.constant 0 : i32
    %c0_i32_0 = arith.constant 0 : i32
    return %c0_i32, %arg1 : i32, i32
  }
  func.func @transform_3(%arg0: i32, %arg1: i32, %arg2: i32) -> (i32, i32) {
    %c0_i32 = arith.constant 0 : i32
    return %arg0, %arg1 : i32, i32
  }
}

module attributes {stable_mosaic.version = 11 : i64} {
  func.func @_matmul_bias_kernel(%arg0: i32, %arg1: i32, %arg2: i32, %arg3: memref<16x512xbf16, #tpu.memory_space<vmem>>, %arg4: memref<512x128xbf16, #tpu.memory_space<vmem>>, %arg5: memref<1x128xf32, #tpu.memory_space<vmem>>, %arg6: memref<16x128xbf16, #tpu.memory_space<vmem>>, %arg7: memref<16x128xf32, #tpu.memory_space<vmem>>) attributes {dimension_semantics = [#tpu.dimension_semantics<parallel>, #tpu.dimension_semantics<parallel>, #tpu.dimension_semantics<arbitrary>], iteration_bounds = array<i64: 1, 1, 4>, scalar_prefetch = 0 : i64, scratch_operands = 1 : i64, tpu.core_type = #tpu.core_type<tc>, window_params = [{transform_indices = @transform_0, window_bounds = array<i64: 16, 512>}, {transform_indices = @transform_1, window_bounds = array<i64: 512, 128>}, {transform_indices = @transform_2, window_bounds = array<i64: 1, 128>}, {transform_indices = @transform_3, window_bounds = array<i64: 16, 128>}]} {
    %c0_i32 = arith.constant 0 : i32
    %0 = arith.cmpi eq, %arg2, %c0_i32 : i32
    %1 = arith.extui %0 : i1 to i32
    %c0_i32_0 = arith.constant 0 : i32
    %2 = arith.cmpi ne, %1, %c0_i32_0 : i32
    scf.if %2 {
      %cst_9 = arith.constant 0.000000e+00 : f32
      %12 = vector.broadcast %cst_9 : f32 to vector<16x128xf32>
      %c0_10 = arith.constant 0 : index
      %c0_11 = arith.constant 0 : index
      %13 = vector.load %arg7[%c0_10, %c0_11] : memref<16x128xf32, #tpu.memory_space<vmem>>, vector<16x128xf32>
      tpu.vector_store %arg7[%c0_10, %c0_11], %12 {strides = array<i32>} : memref<16x128xf32, #tpu.memory_space<vmem>>, vector<16x128xf32>,
    } else {
    }
    %c0 = arith.constant 0 : index
    %c0_1 = arith.constant 0 : index
    %3 = vector.load %arg7[%c0, %c0_1] : memref<16x128xf32, #tpu.memory_space<vmem>>, vector<16x128xf32>
    %c0_2 = arith.constant 0 : index
    %c0_3 = arith.constant 0 : index
    %4 = vector.load %arg3[%c0_2, %c0_3] : memref<16x512xbf16, #tpu.memory_space<vmem>>, vector<16x512xbf16>
    %c0_4 = arith.constant 0 : index
    %c0_5 = arith.constant 0 : index
    %5 = vector.load %arg4[%c0_4, %c0_5] : memref<512x128xbf16, #tpu.memory_space<vmem>>, vector<512x128xbf16>
    %cst = arith.constant dense<0.000000e+00> : vector<16x128xf32>
    %6 = tpu.matmul %4, %5, %cst {dimension_numbers = #tpu.dot_dimension_numbers<[1], [0], [0], [1], [0, 0, 1, 1], [], []>} : vector<16x512xbf16>, vector<512x128xbf16>, vector<16x128xf32> -> vector<16x128xf32>
    %7 = arith.addf %3, %6 : vector<16x128xf32>
    %c0_6 = arith.constant 0 : index
    %c0_7 = arith.constant 0 : index
    %8 = vector.load %arg7[%c0_6, %c0_7] : memref<16x128xf32, #tpu.memory_space<vmem>>, vector<16x128xf32>
    tpu.vector_store %arg7[%c0_6, %c0_7], %7 {strides = array<i32>} : memref<16x128xf32, #tpu.memory_space<vmem>>, vector<16x128xf32>,
    %c3_i32 = arith.constant 3 : i32
    %9 = arith.cmpi eq, %arg2, %c3_i32 : i32
    %10 = arith.extui %9 : i1 to i32
    %c0_i32_8 = arith.constant 0 : i32
    %11 = arith.cmpi ne, %10, %c0_i32_8 : i32
    scf.if %11 {
      %c0_9 = arith.constant 0 : index
      %c0_10 = arith.constant 0 : index
      %12 = vector.load %arg7[%c0_9, %c0_10] : memref<16x128xf32, #tpu.memory_space<vmem>>, vector<16x128xf32>
      %c0_11 = arith.constant 0 : index
      %c0_12 = arith.constant 0 : index
      %13 = vector.load %arg5[%c0_11, %c0_12] : memref<1x128xf32, #tpu.memory_space<vmem>>, vector<1x128xf32>
      %14 = vector.broadcast %13 : vector<1x128xf32> to vector<16x128xf32>
      %15 = arith.addf %12, %14 : vector<16x128xf32>
      %16 = arith.truncf %15 : vector<16x128xf32> to vector<16x128xbf16>
      %c0_13 = arith.constant 0 : index
      %c0_14 = arith.constant 0 : index
      %17 = vector.load %arg6[%c0_13, %c0_14] : memref<16x128xbf16, #tpu.memory_space<vmem>>, vector<16x128xbf16>
      tpu.vector_store %arg6[%c0_13, %c0_14], %16 {strides = array<i32>} : memref<16x128xbf16, #tpu.memory_space<vmem>>, vector<16x128xbf16>,
    } else {
    }
    return
  }
  func.func @transform_0(%arg0: i32, %arg1: i32, %arg2: i32) -> (i32, i32) {
    %c0_i32 = arith.constant 0 : i32
    return %arg0, %arg2 : i32, i32
  }
  func.func @transform_1(%arg0: i32, %arg1: i32, %arg2: i32) -> (i32, i32) {
    %c0_i32 = arith.constant 0 : i32
    return %arg2, %arg1 : i32, i32
  }
  func.func @transform_2(%arg0: i32, %arg1: i32, %arg2: i32) -> (i32, i32) {
    %c0_i32 = arith.constant 0 : i32
    %c0_i32_0 = arith.constant 0 : i32
    return %c0_i32, %arg1 : i32, i32
  }
  func.func @transform_3(%arg0: i32, %arg1: i32, %arg2: i32) -> (i32, i32) {
    %c0_i32 = arith.constant 0 : i32
    return %arg0, %arg1 : i32, i32
  }
}

module attributes {stable_mosaic.version = 11 : i64} {
  func.func @_matmul_bias_kernel(%arg0: i32, %arg1: i32, %arg2: i32, %arg3: memref<16x128xbf16, #tpu.memory_space<vmem>>, %arg4: memref<128x512xbf16, #tpu.memory_space<vmem>>, %arg5: memref<1x512xf32, #tpu.memory_space<vmem>>, %arg6: memref<16x512xbf16, #tpu.memory_space<vmem>>, %arg7: memref<16x512xf32, #tpu.memory_space<vmem>>) attributes {dimension_semantics = [#tpu.dimension_semantics<parallel>, #tpu.dimension_semantics<parallel>, #tpu.dimension_semantics<arbitrary>], iteration_bounds = array<i64: 1, 4, 1>, scalar_prefetch = 0 : i64, scratch_operands = 1 : i64, tpu.core_type = #tpu.core_type<tc>, window_params = [{transform_indices = @transform_0, window_bounds = array<i64: 16, 128>}, {transform_indices = @transform_1, window_bounds = array<i64: 128, 512>}, {transform_indices = @transform_2, window_bounds = array<i64: 1, 512>}, {transform_indices = @transform_3, window_bounds = array<i64: 16, 512>}]} {
    %c0_i32 = arith.constant 0 : i32
    %0 = arith.cmpi eq, %arg2, %c0_i32 : i32
    %1 = arith.extui %0 : i1 to i32
    %c0_i32_0 = arith.constant 0 : i32
    %2 = arith.cmpi ne, %1, %c0_i32_0 : i32
    scf.if %2 {
      %cst_10 = arith.constant 0.000000e+00 : f32
      %12 = vector.broadcast %cst_10 : f32 to vector<16x512xf32>
      %c0_11 = arith.constant 0 : index
      %c0_12 = arith.constant 0 : index
      %13 = vector.load %arg7[%c0_11, %c0_12] : memref<16x512xf32, #tpu.memory_space<vmem>>, vector<16x512xf32>
      tpu.vector_store %arg7[%c0_11, %c0_12], %12 {strides = array<i32>} : memref<16x512xf32, #tpu.memory_space<vmem>>, vector<16x512xf32>,
    } else {
    }
    %c0 = arith.constant 0 : index
    %c0_1 = arith.constant 0 : index
    %3 = vector.load %arg7[%c0, %c0_1] : memref<16x512xf32, #tpu.memory_space<vmem>>, vector<16x512xf32>
    %c0_2 = arith.constant 0 : index
    %c0_3 = arith.constant 0 : index
    %4 = vector.load %arg3[%c0_2, %c0_3] : memref<16x128xbf16, #tpu.memory_space<vmem>>, vector<16x128xbf16>
    %c0_4 = arith.constant 0 : index
    %c0_5 = arith.constant 0 : index
    %5 = vector.load %arg4[%c0_4, %c0_5] : memref<128x512xbf16, #tpu.memory_space<vmem>>, vector<128x512xbf16>
    %cst = arith.constant dense<0.000000e+00> : vector<16x512xf32>
    %6 = tpu.matmul %4, %5, %cst {dimension_numbers = #tpu.dot_dimension_numbers<[1], [0], [0], [1], [0, 0, 1, 1], [], []>} : vector<16x128xbf16>, vector<128x512xbf16>, vector<16x512xf32> -> vector<16x512xf32>
    %7 = arith.addf %3, %6 : vector<16x512xf32>
    %c0_6 = arith.constant 0 : index
    %c0_7 = arith.constant 0 : index
    %8 = vector.load %arg7[%c0_6, %c0_7] : memref<16x512xf32, #tpu.memory_space<vmem>>, vector<16x512xf32>
    tpu.vector_store %arg7[%c0_6, %c0_7], %7 {strides = array<i32>} : memref<16x512xf32, #tpu.memory_space<vmem>>, vector<16x512xf32>,
    %c0_i32_8 = arith.constant 0 : i32
    %9 = arith.cmpi eq, %arg2, %c0_i32_8 : i32
    %10 = arith.extui %9 : i1 to i32
    %c0_i32_9 = arith.constant 0 : i32
    %11 = arith.cmpi ne, %10, %c0_i32_9 : i32
    scf.if %11 {
      %c0_10 = arith.constant 0 : index
      %c0_11 = arith.constant 0 : index
      %12 = vector.load %arg7[%c0_10, %c0_11] : memref<16x512xf32, #tpu.memory_space<vmem>>, vector<16x512xf32>
      %c0_12 = arith.constant 0 : index
      %c0_13 = arith.constant 0 : index
      %13 = vector.load %arg5[%c0_12, %c0_13] : memref<1x512xf32, #tpu.memory_space<vmem>>, vector<1x512xf32>
      %14 = vector.broadcast %13 : vector<1x512xf32> to vector<16x512xf32>
      %15 = arith.addf %12, %14 : vector<16x512xf32>
      %cst_14 = arith.constant 0.000000e+00 : f32
      %16 = vector.broadcast %cst_14 : f32 to vector<16x512xf32>
      %17 = arith.maximumf %15, %16 : vector<16x512xf32>
      %18 = arith.truncf %17 : vector<16x512xf32> to vector<16x512xbf16>
      %c0_15 = arith.constant 0 : index
      %c0_16 = arith.constant 0 : index
      %19 = vector.load %arg6[%c0_15, %c0_16] : memref<16x512xbf16, #tpu.memory_space<vmem>>, vector<16x512xbf16>
      tpu.vector_store %arg6[%c0_15, %c0_16], %18 {strides = array<i32>} : memref<16x512xbf16, #tpu.memory_space<vmem>>, vector<16x512xbf16>,
    } else {
    }
    return
  }
  func.func @transform_0(%arg0: i32, %arg1: i32, %arg2: i32) -> (i32, i32) {
    %c0_i32 = arith.constant 0 : i32
    return %arg0, %arg2 : i32, i32
  }
  func.func @transform_1(%arg0: i32, %arg1: i32, %arg2: i32) -> (i32, i32) {
    %c0_i32 = arith.constant 0 : i32
    return %arg2, %arg1 : i32, i32
  }
  func.func @transform_2(%arg0: i32, %arg1: i32, %arg2: i32) -> (i32, i32) {
    %c0_i32 = arith.constant 0 : i32
    %c0_i32_0 = arith.constant 0 : i32
    return %c0_i32, %arg1 : i32, i32
  }
  func.func @transform_3(%arg0: i32, %arg1: i32, %arg2: i32) -> (i32, i32) {
    %c0_i32 = arith.constant 0 : i32
    return %arg0, %arg1 : i32, i32
  }
}

module attributes {stable_mosaic.version = 11 : i64} {
  func.func @_matmul_bias_kernel(%arg0: i32, %arg1: i32, %arg2: i32, %arg3: memref<8x128xbf16, #tpu.memory_space<vmem>>, %arg4: memref<128x128xbf16, #tpu.memory_space<vmem>>, %arg5: memref<1x128xf32, #tpu.memory_space<vmem>>, %arg6: memref<8x128xf32, #tpu.memory_space<vmem>>, %arg7: memref<8x128xf32, #tpu.memory_space<vmem>>) attributes {dimension_semantics = [#tpu.dimension_semantics<parallel>, #tpu.dimension_semantics<parallel>, #tpu.dimension_semantics<arbitrary>], iteration_bounds = array<i64: 1, 1, 1>, scalar_prefetch = 0 : i64, scratch_operands = 1 : i64, tpu.core_type = #tpu.core_type<tc>, window_params = [{transform_indices = @transform_0, window_bounds = array<i64: 8, 128>}, {transform_indices = @transform_1, window_bounds = array<i64: 128, 128>}, {transform_indices = @transform_2, window_bounds = array<i64: 1, 128>}, {transform_indices = @transform_3, window_bounds = array<i64: 8, 128>}]} {
    %c0_i32 = arith.constant 0 : i32
    %0 = arith.cmpi eq, %arg2, %c0_i32 : i32
    %1 = arith.extui %0 : i1 to i32
    %c0_i32_0 = arith.constant 0 : i32
    %2 = arith.cmpi ne, %1, %c0_i32_0 : i32
    scf.if %2 {
      %cst_10 = arith.constant 0.000000e+00 : f32
      %12 = vector.broadcast %cst_10 : f32 to vector<8x128xf32>
      %c0_11 = arith.constant 0 : index
      %c0_12 = arith.constant 0 : index
      %13 = vector.load %arg7[%c0_11, %c0_12] : memref<8x128xf32, #tpu.memory_space<vmem>>, vector<8x128xf32>
      tpu.vector_store %arg7[%c0_11, %c0_12], %12 {strides = array<i32>} : memref<8x128xf32, #tpu.memory_space<vmem>>, vector<8x128xf32>,
    } else {
    }
    %c0 = arith.constant 0 : index
    %c0_1 = arith.constant 0 : index
    %3 = vector.load %arg7[%c0, %c0_1] : memref<8x128xf32, #tpu.memory_space<vmem>>, vector<8x128xf32>
    %c0_2 = arith.constant 0 : index
    %c0_3 = arith.constant 0 : index
    %4 = vector.load %arg3[%c0_2, %c0_3] : memref<8x128xbf16, #tpu.memory_space<vmem>>, vector<8x128xbf16>
    %c0_4 = arith.constant 0 : index
    %c0_5 = arith.constant 0 : index
    %5 = vector.load %arg4[%c0_4, %c0_5] : memref<128x128xbf16, #tpu.memory_space<vmem>>, vector<128x128xbf16>
    %cst = arith.constant dense<0.000000e+00> : vector<8x128xf32>
    %6 = tpu.matmul %4, %5, %cst {dimension_numbers = #tpu.dot_dimension_numbers<[1], [0], [0], [1], [0, 0, 1, 1], [], []>} : vector<8x128xbf16>, vector<128x128xbf16>, vector<8x128xf32> -> vector<8x128xf32>
    %7 = arith.addf %3, %6 : vector<8x128xf32>
    %c0_6 = arith.constant 0 : index
    %c0_7 = arith.constant 0 : index
    %8 = vector.load %arg7[%c0_6, %c0_7] : memref<8x128xf32, #tpu.memory_space<vmem>>, vector<8x128xf32>
    tpu.vector_store %arg7[%c0_6, %c0_7], %7 {strides = array<i32>} : memref<8x128xf32, #tpu.memory_space<vmem>>, vector<8x128xf32>,
    %c0_i32_8 = arith.constant 0 : i32
    %9 = arith.cmpi eq, %arg2, %c0_i32_8 : i32
    %10 = arith.extui %9 : i1 to i32
    %c0_i32_9 = arith.constant 0 : i32
    %11 = arith.cmpi ne, %10, %c0_i32_9 : i32
    scf.if %11 {
      %c0_10 = arith.constant 0 : index
      %c0_11 = arith.constant 0 : index
      %12 = vector.load %arg7[%c0_10, %c0_11] : memref<8x128xf32, #tpu.memory_space<vmem>>, vector<8x128xf32>
      %c0_12 = arith.constant 0 : index
      %c0_13 = arith.constant 0 : index
      %13 = vector.load %arg5[%c0_12, %c0_13] : memref<1x128xf32, #tpu.memory_space<vmem>>, vector<1x128xf32>
      %14 = vector.broadcast %13 : vector<1x128xf32> to vector<8x128xf32>
      %15 = arith.addf %12, %14 : vector<8x128xf32>
      %c0_14 = arith.constant 0 : index
      %c0_15 = arith.constant 0 : index
      %16 = vector.load %arg6[%c0_14, %c0_15] : memref<8x128xf32, #tpu.memory_space<vmem>>, vector<8x128xf32>
      tpu.vector_store %arg6[%c0_14, %c0_15], %15 {strides = array<i32>} : memref<8x128xf32, #tpu.memory_space<vmem>>, vector<8x128xf32>,
    } else {
    }
    return
  }
  func.func @transform_0(%arg0: i32, %arg1: i32, %arg2: i32) -> (i32, i32) {
    %c0_i32 = arith.constant 0 : i32
    return %arg0, %arg2 : i32, i32
  }
  func.func @transform_1(%arg0: i32, %arg1: i32, %arg2: i32) -> (i32, i32) {
    %c0_i32 = arith.constant 0 : i32
    return %arg2, %arg1 : i32, i32
  }
  func.func @transform_2(%arg0: i32, %arg1: i32, %arg2: i32) -> (i32, i32) {
    %c0_i32 = arith.constant 0 : i32
    %c0_i32_0 = arith.constant 0 : i32
    return %c0_i32, %arg1 : i32, i32
  }
  func.func @transform_3(%arg0: i32, %arg1: i32, %arg2: i32) -> (i32, i32) {
    %c0_i32 = arith.constant 0 : i32
    return %arg0, %arg1 : i32, i32
  }
}

</mosaic_0001>

<bundles_post_ra>
// kernel: bert_forward.17
= control target key start
LH: loop header
LB: loop body
LE: loop exit
PB: predicated region body
PF: predicated region fallthrough
CT: control target
= control target key end

     0   :  { %v270_v1 = vmov 0   ;;  %v191_v18 = vlaneseq  ;;  %s351_s1 = inlined_call_operand.vmem [shape: bf16[128,256], index: 1, kind: input, shape index: {}]   ;;  %s352_s0 = inlined_call_operand.vmem [shape: bf16[16,128], index: 0, kind: input, shape index: {}]   ;;  %s353_s2 = inlined_call_operand.vmem [shape: f32[1,256], index: 2, kind: input, shape index: {}]   ;;  %s354_s3 = inlined_call_operand.vmem [shape: bf16[16,256], index: 3, kind: output, shape index: {}]  }
   0x1   :  { %v245_v0 = vld [vmem:[%s351_s1 + $0x4] ss:$8 sps:$4 sm:$0xff]   ;;  %163 = vmatprep.mubr.bf16.mxu0 %v270_v1  ;;  %v247_v2 = vld [vmem:[%s351_s1] ss:$8 sps:$4 sm:$0xff]   ;;  %v248_v3 = vld [vmem:[%s351_s1 + $0x14] ss:$8 sps:$4 sm:$0xff]  }
   0x2   :  { %131 = vmatprep.subr.bf16.mxu0 %v245_v0  ;;  %v250_v4 = vld [vmem:[%s351_s1 + $0x10] ss:$8 sps:$4 sm:$0xff]   ;;  %v251_v5 = vld [vmem:[%s351_s1 + $0x24] ss:$8 sps:$4 sm:$0xff]   ;;  %v253_v6 = vld [vmem:[%s351_s1 + $0x20] ss:$8 sps:$4 sm:$0xff]  }
   0x3   :  { %132 = vmatpush1.bf16.msra.mxu0 %v247_v2  ;;  %v254_v7 = vld [vmem:[%s351_s1 + $0x34] ss:$8 sps:$4 sm:$0xff]   ;;  %v256_v8 = vld [vmem:[%s351_s1 + $0x30] ss:$8 sps:$4 sm:$0xff]   ;;  %v257_v9 = vld [vmem:[%s351_s1 + $0x44] ss:$8 sps:$4 sm:$0xff]  }
   0x4   :  { %133 = vmatprep.subr.bf16.mxu0 %v248_v3  ;;  %v259_v10 = vld [vmem:[%s351_s1 + $0x40] ss:$8 sps:$4 sm:$0xff]   ;;  %v260_v11 = vld [vmem:[%s351_s1 + $0x54] ss:$8 sps:$4 sm:$0xff]   ;;  %v262_v12 = vld [vmem:[%s351_s1 + $0x50] ss:$8 sps:$4 sm:$0xff]  }
   0x5   :  { %v263_v13 = vld [vmem:[%s351_s1 + $0x64] ss:$8 sps:$4 sm:$0xff]   ;;  %v265_v14 = vld [vmem:[%s351_s1 + $0x60] ss:$8 sps:$4 sm:$0xff]   ;;  %v266_v15 = vld [vmem:[%s351_s1 + $0x74] ss:$8 sps:$4 sm:$0xff]  }
   0x6   :  { %v268_v16 = vld [vmem:[%s351_s1 + $0x70] ss:$8 sps:$4 sm:$0xff]   ;;  %v269_v17 = vld [vmem:[%s352_s0] sm:$0xff]   ;;  %v192_v19 = vshrl.u32 %v191_v18, 7 }
   0x7   :  { %134 = vmatpush1.bf16.msra.mxu0 %v250_v4  ;;  %v189_v21 = vld [vmem:[%s353_s2] sm:$0x3] }
   0x8   :  { %135 = vmatprep.subr.bf16.mxu0 %v251_v5  ;;  %v193_v20 = vsub.s32 0, %v192_v19  ;;  %v197_v22 = vsub.s32 1, %v192_v19 }
   0xa   :  { %v194_v23 = vrot.slane %v189_v21, %v193_v20  ;;  %v198_v24 = vrot.slane %v189_v21, %v197_v22 }
   0xb   :  { %136 = vmatpush1.bf16.msra.mxu0 %v253_v6 }
   0xc   :  { %137 = vmatprep.subr.bf16.mxu0 %v254_v7 }
   0xf   :  { %138 = vmatpush1.bf16.msra.mxu0 %v256_v8 }
  0x10   :  { %139 = vmatprep.subr.bf16.mxu0 %v257_v9 }
  0x13   :  { %140 = vmatpush1.bf16.msra.mxu0 %v259_v10 }
  0x14   :  { %141 = vmatprep.subr.bf16.mxu0 %v260_v11 }
  0x17   :  { %142 = vmatpush1.bf16.msra.mxu0 %v262_v12 }
  0x18   :  { %143 = vmatprep.subr.bf16.mxu0 %v263_v13 }
  0x1b   :  { %144 = vmatpush1.bf16.msra.mxu0 %v265_v14 }
  0x1c   :  { %145 = vmatprep.subr.bf16.mxu0 %v266_v15 }
  0x1f   :  { %146 = vmatpush1.bf16.msra.mxu0 %v268_v16 }
  0x22   :  { %164 = vmatmul.mubr.bf16.vlgmr.msra.gmra.mrb[0].mxu0 %v269_v17 }
  0xf5   :  { %v165_v25 = vpop.f32.mrb[0].mxu0 }
  0xf6   :  { %v201_v26 = vadd.f32 %v194_v23, %v165_v25  ;;  %v167_v27 = vpop.f32.mrb[1].mxu0 }
  0xf7   :  { %v202_v28 = vadd.f32 %v198_v24, %v167_v27  ;;  %v169_v29 = vpop.f32.mrb[2].mxu0 }
  0xf8   :  { %v203_v30 = vadd.f32 %v194_v23, %v169_v29  ;;  %v171_v31 = vpop.f32.mrb[3].mxu0 }
  0xf9   :  { %v242_v32 = vpack.c.bf16 %v202_v28, %v201_v26  ;;  %v204_v33 = vadd.f32 %v198_v24, %v171_v31 }
  0xfb   :  { %217 = vst [vmem:[%s354_s3] sm:$0xff] %v242_v32  ;;  %v243_v34 = vpack.c.bf16 %v204_v33, %v203_v30 }
  0xfd   :  { %218 = vst [vmem:[%s354_s3 + $0x8] sm:$0xff] %v243_v34 }

// kernel: bert_forward.18
= control target key start
LH: loop header
LB: loop body
LE: loop exit
PB: predicated region body
PF: predicated region fallthrough
CT: control target
= control target key end

     0   :  { %s637_s12 = smov 0   ;;  %s639_s13 = smov 0   ;;  %s693_s0 = inlined_call_operand.vmem [shape: bf16[16,8,8], index: 0, kind: input, shape index: {}]   ;;  %s694_s1 = inlined_call_operand.vmem [shape: bf16[16,8,8], index: 1, kind: input, shape index: {}]   ;;  %s695_s2 = inlined_call_operand.vmem [shape: bf16[16,8,8], index: 2, kind: input, shape index: {}]   ;;  %s696_s3 = inlined_call_operand.vmem [shape: bf16[16,8,8], index: 3, kind: output, shape index: {}]  }
   0x1   :  { %s641_s14 = smov 0  }
   0x2 LB: > { %s32_s15 = sadd.s32 1, %s607_s13  ;;  %p528_p0 = scmp.ge.s32.totalorder %s611_s14, 1  ;;  %s611_s14 = sphi %s641_s14, %s13_s14   ;;  %s607_s13 = sphi %s639_s13, %s698_s13   ;;  %s603_s12 = sphi %s637_s12, %s697_s12  }
   0x3   : > { %p34_p1 = scmp.ge.s32.totalorder %s32_s15, 16  ;;  %p190_p2 = scmp.lt.s32.totalorder %s611_s14, 17 }
   0x5   : > { %s700_s15 = smov (%p34_p1, %s32_s15), 0  ;;  %p191_p3 = pnand %p528_p0, %p190_p2 }
   0x6   : > { %p232_p4 = scmp.lt.s32.totalorder (!%p191_p3), %s603_s12, 15  ;;  %vm268_vm0 = vcmask (!%p191_p3), 64512   ;;  %v613_v0 = vmov (!%p191_p3), 0.0   ;;  %vm614_vm1 = vmmov (!%p191_p3), 0   ;;  %vm265_vm2 = vcmask (!%p191_p3), 7168  }
   0x7   : > { %194 = sbr.rel (%p191_p3) target bundleno = 823 (0x337), region = 32  ;;  %541 = vmatprep.subr.bf16.mxu0 (!%p191_p3), %v613_v0  ;;  %269 = vst.msk [vmem:[#allocation4] sm:$0xff] (!%p191_p3), %vm268_vm0, %v613_v0  ;;  %543 = vmatprep.mubr.msk.bf16.mxu0 (!%p191_p3), %vm614_vm1, %v613_v0  ;;  %v615_v4 = vmov (!%p191_p3), -1e+30   ;;  %v616_v10 = vmov (!%p191_p3), 0   ;;  %vm348_vm3 = vcmask (!%p191_p3), 1043456  }
   0x8   : > { %547 = vmatprep.subr.bf16.mxu1 (!%p191_p3), %v613_v0  ;;  %549 = vmatprep.mubr.msk.bf16.mxu1 (!%p191_p3), %vm614_vm1, %v613_v0  ;;  %266 = vst.msk [vmem:[#allocation2] sm:$0xff] (!%p191_p3), %vm265_vm2, %v615_v4  ;;  %267 = vst.msk [vmem:[#allocation3] sm:$0xff] (!%p191_p3), %vm265_vm2, %v613_v0  ;;  %vm415_vm4 = vcmask (!%p191_p3), 60416  }
   0x9   : > { %581 = vset.pattern.permute.xlu0 (!%p191_p3), %v616_v10  ;;  %582 = vset.pattern.permute.xlu1 (!%p191_p3), %v616_v10 }
   0xe   : > { %s702_s12 = smov (!%p232_p4, %s603_s12), 15  ;;  %v392_v31 = vld [vmem:[#allocation4] sm:$0xff] }
   0xf   : > { %s656_s16 = sshll.u32 %s702_s12, 2  ;;  %v319_v11 = vld [vmem:[#allocation2] sm:$0xff]  ;;  %v335_v25 = vld [vmem:[#allocation3] sm:$0xff] }
  0x10   : > { %s245_s19 = scalar_lea.vmem %s694_s1, %s656_s16  ;;  %s238_s22 = scalar_lea.vmem %s693_s0, %s656_s16 }
  0x11   : > { %v271_v1 = vld [vmem:[%s245_s19] sm:$0xf]  ;;  %s252_s25 = scalar_lea.vmem %s695_s2, %s656_s16  ;;  %s259_s28 = scalar_lea.vmem %s696_s3, %s656_s16 }
  0x12   : > { %v277_v2 = vsel %vm268_vm0, %v271_v1, 0  ;;  %v270_v3 = vld [vmem:[%s238_s22] sm:$0xf] }
  0x13   : > { %542 = vmatpush3.bf16.xpose.msra.mxu0 %v277_v2  ;;  %v344_v15 = vld [vmem:[%s252_s25] sm:$0xf] }
  0x14   : > { %v350_v16 = vsel %vm348_vm3, %v344_v15, 0 }
  0x15   : > { %548 = vmatpush3.bf16.msra.mxu1 %v350_v16 }
  0x1a   : > { %544 = vmatmul.mubr.msk.bf16.vlgmr.msra.gmra.mrb[0].mxu0 %vm268_vm0, %v270_v3 }
  0xed   : > { %v313_v5 = vpop.f32.mrb[0].mxu0 }
  0xee   : > { %v545_v6 = vpop.f32.mrb[1].mxu0  ;;  %v320_v7 = vsel %vm268_vm0, %v313_v5, -inf }
  0xef   : > { %321 = vmax.xlane.f32.xlu0 %v320_v7  ;;  %v316_v8 = vpop.f32.mrb[2].mxu0 }
  0xf0   : > { %v546_v9 = vpop.f32.mrb[3].mxu0 }
 0x17c   : > { %v322_v12 = vpop.xlane.xlu0 %321 }
 0x17d   : > { %v323_v13 = vmax.f32 %v319_v11, %v322_v12 }
 0x17f   : > { %v324_v14 = vsub.f32 %v319_v11, %v323_v13  ;;  %401 = vst.msk [vmem:[#allocation2] sm:$0xff] %vm265_vm2, %v323_v13  ;;  %329 = vperm.xlu0 %581, %v323_v13  }
 0x181   : > { %v325_v23 = vmul.f32 1.442695, %v324_v14 }
 0x1fe   : > { %v330_v17 = vpop.permute.xlu0 %329 }
 0x1ff   : > { %v332_v18 = vsub.f32 %v313_v5, %v330_v17 }
 0x201   : > { %v333_v19 = vmul.f32 1.442695, %v332_v18 }
 0x203   : > { %583 = vpow2.f32 %v333_v19 }
 0x204   : > { %585 = vpow2.f32 %v325_v23 }
 0x20d   : > { %v584_v20 = vpop.eup %583 }
 0x20e   : > { %v337_v21 = vsel %vm268_vm0, %v584_v20, 0.0  ;;  %v343_v22 = vpack.c.bf16 %v584_v20, %v584_v20  ;;  %v586_v24 = vpop.eup %585 }
 0x20f   : > { %338 = vadd.xlane.f32.xlu1 %v337_v21  ;;  %v336_v26 = vmul.f32 %v586_v24, %v335_v25 }
 0x210   : > { %550 = vmatmul.mubr.msk.bf16.vlgmr.msra.gmra.mrb[0].mxu1 %vm268_vm0, %v343_v22 }
 0x220   : > { %395 = vperm.xlu1 %582, %v586_v24  }
 0x29c   : > { %v339_v27 = vpop.xlane.xlu1 %338 }
 0x29d   : > { %v340_v28 = vadd.f32 %v339_v27, %v336_v26 }
 0x29f   : > { %342 = vst.msk [vmem:[#allocation3] sm:$0xff] %vm265_vm2, %v340_v28 }
 0x2a0   : > { %v396_v32 = vpop.permute.xlu1 %395 }
 0x2a1   : > { %v398_v33 = vmul.f32 %v396_v32, %v392_v31 }
 0x2a6   : > { %v405_v29 = vld [vmem:[#allocation3] sm:$0xff] }
 0x2a7   : > { %587 = vrcp.f32 %v405_v29 }
 0x2b1   : > { %v588_v30 = vpop.eup %587 }
 0x2b2   : > { %410 = vperm.xlu1 %582, %v588_v30  }
 0x2e3   : > { %v386_v34 = vpop.f32.mrb[0].mxu1 }
 0x2e4   : > { %v399_v35 = vadd.f32 %v398_v33, %v386_v34  ;;  %v551_v36 = vpop.f32.mrb[1].mxu1 }
 0x2e5   : > { %v389_v37 = vpop.f32.mrb[2].mxu1 }
 0x2e6   : > { %400 = vst.msk [vmem:[#allocation4] sm:$0xff] %vm268_vm0, %v399_v35  ;;  %v552_v38 = vpop.f32.mrb[3].mxu1 }
 0x2ed   : > { %v407_v39 = vld [vmem:[#allocation4] sm:$0xff] }
 0x331   : > { %v411_v40 = vpop.permute.xlu1 %410 }
 0x332   : > { %v413_v41 = vmul.f32 %v411_v40, %v407_v39 }
 0x334   : > { %v414_v42 = vpack.c.bf16 %v413_v41, %v413_v41 }
 0x336   : > { %416 = vst.msk [vmem:[%s259_s28] sm:$0xf] %vm415_vm4, %v414_v42 }
 0x337 PF: > { %s13_s14 = sadd.s32 1, %s611_s14   ;;  %s697_s12 = smov %s607_s13 }
 0x338   : > { %p10_p5 = scmp.ge.s32.totalorder %s13_s14, 18   ;;  %s698_s13 = smov %s700_s15 }
 0x33a   :  { %12 = sbr.rel (!%p10_p5) target bundleno = 2 (0x2), region = 76 }

// kernel: bert_forward.16
= control target key start
LH: loop header
LB: loop body
LE: loop exit
PB: predicated region body
PF: predicated region fallthrough
CT: control target
= control target key end

     0   :  { %vm27_vm0 = vcmask 523264   ;;  %vm81_vm1 = vcmask 519168   ;;  %s153_s0 = inlined_call_operand.vmem [shape: bf16[16,64], index: 0, kind: input, shape index: {}]   ;;  %s154_s1 = inlined_call_operand.vmem [shape: bf16[16,64], index: 1, kind: input, shape index: {}]   ;;  %s155_s2 = inlined_call_operand.vmem [shape: f32[1,64], index: 2, kind: input, shape index: {}]   ;;  %s156_s3 = inlined_call_operand.vmem [shape: f32[1,64], index: 3, kind: input, shape index: {}]   ;;  %s157_s4 = inlined_call_operand.vmem [shape: bf16[16,64], index: 4, kind: output, shape index: {}]  }
   0x1   :  { %v95_v0 = vld [vmem:[%s153_s0] sm:$0xff]  }
   0x2   :  { %v99_v1 = vld [vmem:[%s154_s1] sm:$0xff]   ;;  %v96_v2 = vunpack.c.l.bf16 %v95_v0  ;;  %v97_v4 = vunpack.c.h.bf16 %v95_v0 }
   0x3   :  { %v100_v3 = vunpack.c.l.bf16 %v99_v1  ;;  %v101_v5 = vunpack.c.h.bf16 %v99_v1  ;;  %v88_v27 = vld [vmem:[%s155_s2] ss:$0 sm:$0xff] }
   0x4   :  { %v89_v29 = vld [vmem:[%s156_s3] ss:$0 sm:$0xff] }
   0x5   :  { %v25_v6 = vadd.f32 %v100_v3, %v96_v2  ;;  %v26_v7 = vadd.f32 %v101_v5, %v97_v4 }
   0x7   :  { %v28_v8 = vsel %vm27_vm0, %v25_v6, 0.0  ;;  %v31_v9 = vsel %vm27_vm0, %v26_v7, 0.0 }
   0x8   :  { %29 = vadd.xlane.f32.xlu0 %v28_v8 }
   0xc   :  { %32 = vadd.xlane.f32.xlu0 %v31_v9 }
  0x95   :  { %v30_v10 = vpop.xlane.xlu0 %29 }
  0x96   :  { %v35_v11 = vmul.f32 0.015625, %v30_v10 }
  0x98   :  { %v37_v12 = vsub.f32 %v25_v6, %v35_v11 }
  0x99   :  { %v33_v13 = vpop.xlane.xlu0 %32 }
  0x9a   :  { %v36_v14 = vmul.f32 0.015625, %v33_v13  ;;  %v39_v15 = vmul.f32 %v37_v12, %v37_v12 }
  0x9c   :  { %v38_v16 = vsub.f32 %v26_v7, %v36_v14  ;;  %v41_v17 = vsel %vm27_vm0, %v39_v15, 0.0 }
  0x9d   :  { %42 = vadd.xlane.f32.xlu1 %v41_v17 }
  0x9e   :  { %v40_v18 = vmul.f32 %v38_v16, %v38_v16 }
  0xa0   :  { %v44_v19 = vsel %vm27_vm0, %v40_v18, 0.0 }
  0xa1   :  { %45 = vadd.xlane.f32.xlu1 %v44_v19 }
 0x12a   :  { %v43_v20 = vpop.xlane.xlu1 %42 }
 0x12b   :  { %v47_v21 = vmul.f32 0.015625, %v43_v20 }
 0x12d   :  { %v49_v22 = vadd.f32 1e-05, %v47_v21 }
 0x12e   :  { %v46_v23 = vpop.xlane.xlu1 %45 }
 0x12f   :  { %102 = vrsqrt.f32 %v49_v22  ;;  %v48_v24 = vmul.f32 0.015625, %v46_v23 }
 0x131   :  { %v50_v25 = vadd.f32 1e-05, %v48_v24 }
 0x133   :  { %104 = vrsqrt.f32 %v50_v25 }
 0x139   :  { %v103_v26 = vpop.eup %102 }
 0x13a   :  { %v53_v28 = vmul.f32 %v103_v26, %v37_v12 }
 0x13c   :  { %v62_v30 = vmul.f32 %v88_v27, %v53_v28 }
 0x13d   :  { %v105_v31 = vpop.eup %104 }
 0x13e   :  { %v71_v32 = vadd.f32 %v89_v29, %v62_v30  ;;  %v54_v33 = vmul.f32 %v105_v31, %v38_v16 }
 0x140   :  { %v92_v34 = vpack.c.bf16 %v71_v32, %v71_v32  ;;  %v63_v35 = vmul.f32 %v88_v27, %v54_v33 }
 0x142   :  { %82 = vst.msk [vmem:[%s157_s4] sm:$0xf] %vm81_vm1, %v92_v34  ;;  %v72_v36 = vadd.f32 %v89_v29, %v63_v35 }
 0x144   :  { %v93_v37 = vpack.c.bf16 %v72_v36, %v72_v36 }
 0x146   :  { %83 = vst.msk [vmem:[%s157_s4 + $0x4] sm:$0xf] %vm81_vm1, %v93_v37 }

// kernel: bert_forward.19
= control target key start
LH: loop header
LB: loop body
LE: loop exit
PB: predicated region body
PF: predicated region fallthrough
CT: control target
= control target key end

     0   :  { %v227_v0 = vmov 0.0   ;;  %vm228_vm0 = vmmov 0   ;;  %s282_s1 = inlined_call_operand.vmem [shape: bf16[128,128], index: 1, kind: input, shape index: {}]   ;;  %s283_s0 = inlined_call_operand.vmem [shape: bf16[16,128], index: 0, kind: input, shape index: {}]   ;;  %s284_s2 = inlined_call_operand.vmem [shape: f32[1,128], index: 2, kind: input, shape index: {}]   ;;  %s285_s3 = inlined_call_operand.vmem [shape: bf16[16,128], index: 3, kind: output, shape index: {}]  }
   0x1   :  { %196 = vmatprep.subr.bf16.mxu0 %v227_v0  ;;  %v218_v1 = vld [vmem:[%s282_s1] sm:$0xff]   ;;  %212 = vmatprep.mubr.msk.bf16.mxu0 %vm228_vm0, %v227_v0  ;;  %v219_v2 = vld [vmem:[%s282_s1 + $0x8] sm:$0xff]   ;;  %v220_v3 = vld [vmem:[%s282_s1 + $0x10] sm:$0xff]  }
   0x2   :  { %197 = vmatpush3.bf16.msra.mxu0 %v218_v1  ;;  %v221_v4 = vld [vmem:[%s282_s1 + $0x18] sm:$0xff]   ;;  %v222_v5 = vld [vmem:[%s282_s1 + $0x20] sm:$0xff]   ;;  %v223_v6 = vld [vmem:[%s282_s1 + $0x28] sm:$0xff]  }
   0x3   :  { %198 = vmatprep.subr.bf16.mxu0 %v227_v0  ;;  %v224_v7 = vld [vmem:[%s282_s1 + $0x30] sm:$0xff]   ;;  %v225_v8 = vld [vmem:[%s282_s1 + $0x38] sm:$0xff]   ;;  %v226_v9 = vld [vmem:[%s283_s0] sm:$0xff]  }
   0x4   :  { %v177_v11 = vld [vmem:[%s284_s2] ss:$0 sm:$0xff] }
   0x6   :  { %199 = vmatpush3.bf16.msra.mxu0 %v219_v2 }
   0x7   :  { %200 = vmatprep.subr.bf16.mxu0 %v227_v0 }
   0xa   :  { %201 = vmatpush3.bf16.msra.mxu0 %v220_v3 }
   0xb   :  { %202 = vmatprep.subr.bf16.mxu0 %v227_v0 }
   0xe   :  { %203 = vmatpush3.bf16.msra.mxu0 %v221_v4 }
   0xf   :  { %204 = vmatprep.subr.bf16.mxu0 %v227_v0 }
  0x12   :  { %205 = vmatpush3.bf16.msra.mxu0 %v222_v5 }
  0x13   :  { %206 = vmatprep.subr.bf16.mxu0 %v227_v0 }
  0x16   :  { %207 = vmatpush3.bf16.msra.mxu0 %v223_v6 }
  0x17   :  { %208 = vmatprep.subr.bf16.mxu0 %v227_v0 }
  0x1a   :  { %209 = vmatpush3.bf16.msra.mxu0 %v224_v7 }
  0x1b   :  { %210 = vmatprep.subr.bf16.mxu0 %v227_v0 }
  0x1e   :  { %211 = vmatpush3.bf16.msra.mxu0 %v225_v8 }
  0x21   :  { %213 = vmatmul.mubr.bf16.vlgmr.msra.gmra.mrb[0].mxu0 %v226_v9 }
  0xf4   :  { %v129_v10 = vpop.f32.mrb[0].mxu0 }
  0xf5   :  { %v214_v12 = vpop.f32.mrb[1].mxu0  ;;  %v152_v14 = vadd.f32 %v177_v11, %v129_v10 }
  0xf6   :  { %v132_v13 = vpop.f32.mrb[2].mxu0 }
  0xf7   :  { %v153_v15 = vadd.f32 %v177_v11, %v132_v13  ;;  %v215_v16 = vpop.f32.mrb[3].mxu0 }
  0xf9   :  { %v185_v17 = vpack.c.bf16 %v153_v15, %v152_v14 }
  0xfb   :  { %186 = vst [vmem:[%s285_s3] sm:$0xff] %v185_v17  }

// kernel: bert_forward.22
= control target key start
LH: loop header
LB: loop body
LE: loop exit
PB: predicated region body
PF: predicated region fallthrough
CT: control target
= control target key end

     0   :  { %s1038_s12 = smov 0   ;;  %s1040_s13 = smov 0   ;;  %s1151_s0 = inlined_call_operand.vmem [shape: bf16[16,2048], index: 0, kind: input, shape index: {}]   ;;  %s1152_s1 = inlined_call_operand.vmem [shape: bf16[2048,128], index: 1, kind: input, shape index: {}]   ;;  %s1153_s2 = inlined_call_operand.vmem [shape: f32[1,128], index: 2, kind: input, shape index: {}]   ;;  %s1154_s3 = inlined_call_operand.vmem [shape: bf16[16,128], index: 3, kind: output, shape index: {}]  }
   0x1   :  { %s1042_s14 = smov 0   ;;  %s1044_s15 = smov 0  }
   0x2   :  { %s1046_s16 = smov 0  }
   0x3 LB: > { %s25_s17 = sadd.s32 1, %s1011_s15  ;;  %p48_p1 = scmp.ne.s32.totalorder %s1003_s13, %s999_s12  ;;  %s1015_s16 = sphi %s1046_s16, %s13_s16   ;;  %s1011_s15 = sphi %s1044_s15, %s1158_s15   ;;  %s1007_s14 = sphi %s1042_s14, %s1157_s14   ;;  %s1003_s13 = sphi %s1040_s13, %s1156_s13   ;;  %s999_s12 = sphi %s1038_s12, %s1155_s12  }
   0x4   : > { %p26_p0 = scmp.ge.s32.totalorder %s25_s17, 4  ;;  %p49_p2 = scmp.eq.s32.totalorder %s1015_s16, 0 }
   0x5   : > { %s41_s19 = sadd.s32 1, %s1003_s13  ;;  %p793_p5 = scmp.ge.s32.totalorder %s1015_s16, 4 }
   0x6   : > { %s1160_s17 = smov (%p26_p0, %s25_s17), 0  ;;  %p50_p3 = por %p49_p2, %p48_p1 }
   0x7   : > { %s37_s18 = ssub.s32 %s1011_s15, %s1160_s17  ;;  %162 = sbr.rel (%p793_p5) target bundleno = 21 (0x15), region = 20 }
   0x8   : > { %p39_p4 = scmp.eq.s32.totalorder %s37_s18, 0 }
   0xa   : > { %s1073_s20 = scalar_select %p39_p4, %s1003_s13, %s41_s19  }
   0xe   : > { %165 = sbr.rel (!%p50_p3) target bundleno = 21 (0x15), region = 24  ;;  %s167_s21 = sand.u32 (%p50_p3), 1, %s1003_s13  }
   0xf   : > { %s846_s22 = sshll.u32 (%p50_p3), %s1011_s15, 4  ;;  %s794_s23 = sshll.u32 (%p50_p3), %s167_s21, 5 }
  0x10   : > { %s175_s26 = scalar_lea.vmem (%p50_p3), %s1151_s0, %s846_s22  ;;  %s169_s27 = scalar_lea.vmem (%p50_p3), [#allocation3], %s794_s23 }
  0x11   : > { %v188_v0 = vld [vmem:[%s175_s26] sm:$0xff] (%p50_p3)  ;;  %v190_v1 = vld [vmem:[%s175_s26 + $0x8] sm:$0xff] (%p50_p3) }
  0x12   : > { %v192_v2 = vld [vmem:[%s175_s26 + $0x40] sm:$0xff] (%p50_p3)  ;;  %189 = vst [vmem:[%s169_s27] sm:$0xff] (%p50_p3), %v188_v0  ;;  %191 = vst [vmem:[%s169_s27 + $0x8] sm:$0xff] (%p50_p3), %v190_v1  ;;  %v194_v3 = vld [vmem:[%s175_s26 + $0x48] sm:$0xff] (%p50_p3) }
  0x13   : > { %193 = vst [vmem:[%s169_s27 + $0x10] sm:$0xff] (%p50_p3), %v192_v2  ;;  %195 = vst [vmem:[%s169_s27 + $0x18] sm:$0xff] (%p50_p3), %v194_v3 }
  0x15 PF: > { %p797_p6 = scmp.ge.s32.totalorder %s1015_s16, 1  ;;  %p212_p7 = scmp.lt.s32.totalorder %s1015_s16, 5 }
  0x17   : > { %p213_p8 = pnand %p797_p6, %p212_p7 }
  0x18   : > { %s219_s28 = sand.u32 (!%p213_p8), 1, %s999_s12   ;;  %s799_s29 = sshll.u32 (!%p213_p8), %s1007_s14, 6 }
  0x19   : > { %216 = sbr.rel (%p213_p8) target bundleno = 308 (0x134), region = 51  ;;  %s798_s30 = sshll.u32 (!%p213_p8), %s219_s28, 5 }
  0x1a   : > { %p259_p9 = scmp.lt.s32.totalorder (!%p213_p8), %s799_s29, 255  ;;  %s1090_s8 = scalar_lea.vmem (!%p213_p8), [#allocation3], %s798_s30 }
  0x1b   : > { %p801_p10 = scmp.ne.s32.totalorder (!%p213_p8), %s1007_s14, 0 }
  0x20   : > { %s1162_s29 = smov (!%p259_p9, %s799_s29), 255  ;;  %283 = sbr.rel (%p801_p10) target bundleno = 39 (0x27), region = 59 }
  0x21   : > { %s800_s4 = sshll.u32 %s1162_s29, 2  ;;  %v1017_v4 = vmov (!%p801_p10), 0.0  }
  0x22   : > { %s1088_s7 = scalar_lea.vmem %s1152_s1, %s800_s4  ;;  %284 = vst [vmem:[#allocation2] sm:$0xff] (!%p801_p10), %v1017_v4  ;;  %285 = vst [vmem:[#allocation2 + $0x8] sm:$0xff] (!%p801_p10), %v1017_v4 }
  0x27 PF: > { %v939_v5 = vld [vmem:[%s1088_s7 + $0x40] sm:$0xff]   ;;  %v943_v9 = vld [vmem:[%s1088_s7 + $0x48] sm:$0xff]   ;;  %v947_v13 = vld [vmem:[%s1088_s7 + $0x50] sm:$0xff]   ;;  %p838_p11 = scmp.ne.s32.totalorder %s1007_s14, 3 }
  0x28   : > { %v940_v6 = vld [vmem:[%s1088_s7 + $0xc0] sm:$0xff]   ;;  %854 = vmatprep.subr.bf16.mxu0 %v939_v5  ;;  %v944_v10 = vld [vmem:[%s1088_s7 + $0xc8] sm:$0xff]   ;;  %v948_v14 = vld [vmem:[%s1088_s7 + $0xd0] sm:$0xff]  }
  0x29   : > { %v941_v7 = vld [vmem:[%s1088_s7] sm:$0xff]   ;;  %876 = vmatprep.subr.bf16.mxu1 %v940_v6  ;;  %v945_v11 = vld [vmem:[%s1088_s7 + $0x8] sm:$0xff]   ;;  %v949_v15 = vld [vmem:[%s1088_s7 + $0x10] sm:$0xff]  }
  0x2a   : > { %v942_v8 = vld [vmem:[%s1088_s7 + $0x80] sm:$0xff]   ;;  %855 = vmatpush3.bf16.msra.mxu0 %v941_v7  ;;  %v946_v12 = vld [vmem:[%s1088_s7 + $0x88] sm:$0xff]   ;;  %v950_v16 = vld [vmem:[%s1088_s7 + $0x90] sm:$0xff]  }
  0x2b   : > { %877 = vmatpush3.bf16.msra.mxu1 %v942_v8  ;;  %856 = vmatprep.subr.bf16.mxu0 %v943_v9  ;;  %v951_v17 = vld [vmem:[%s1088_s7 + $0x58] sm:$0xff]   ;;  %v955_v21 = vld [vmem:[%s1088_s7 + $0x60] sm:$0xff]   ;;  %v959_v25 = vld [vmem:[%s1088_s7 + $0x68] sm:$0xff]  }
  0x2c   : > { %878 = vmatprep.subr.bf16.mxu1 %v944_v10  ;;  %v952_v18 = vld [vmem:[%s1088_s7 + $0xd8] sm:$0xff]   ;;  %v956_v22 = vld [vmem:[%s1088_s7 + $0xe0] sm:$0xff]   ;;  %v960_v26 = vld [vmem:[%s1088_s7 + $0xe8] sm:$0xff]  }
  0x2d   : > { %v953_v19 = vld [vmem:[%s1088_s7 + $0x18] sm:$0xff]   ;;  %v957_v23 = vld [vmem:[%s1088_s7 + $0x20] sm:$0xff]   ;;  %v961_v27 = vld [vmem:[%s1088_s7 + $0x28] sm:$0xff]  }
  0x2e   : > { %857 = vmatpush3.bf16.msra.mxu0 %v945_v11  ;;  %v954_v20 = vld [vmem:[%s1088_s7 + $0x98] sm:$0xff]   ;;  %v958_v24 = vld [vmem:[%s1088_s7 + $0xa0] sm:$0xff]   ;;  %v962_v28 = vld [vmem:[%s1088_s7 + $0xa8] sm:$0xff]  }
  0x2f   : > { %879 = vmatpush3.bf16.msra.mxu1 %v946_v12  ;;  %858 = vmatprep.subr.bf16.mxu0 %v947_v13  ;;  %v963_v29 = vld [vmem:[%s1088_s7 + $0x70] sm:$0xff]   ;;  %v967_v33 = vld [vmem:[%s1088_s7 + $0x78] sm:$0xff]   ;;  %v286_v50 = vld [vmem:[#allocation2] sm:$0xff] }
  0x30   : > { %880 = vmatprep.subr.bf16.mxu1 %v948_v14  ;;  %v964_v30 = vld [vmem:[%s1088_s7 + $0xf0] sm:$0xff]   ;;  %v968_v34 = vld [vmem:[%s1088_s7 + $0xf8] sm:$0xff]   ;;  %v287_v55 = vld [vmem:[#allocation2 + $0x8] sm:$0xff] }
  0x31   : > { %v965_v31 = vld [vmem:[%s1088_s7 + $0x30] sm:$0xff]   ;;  %v969_v35 = vld [vmem:[%s1088_s7 + $0x38] sm:$0xff]   ;;  %v839_v61 = vld [vmem:[%s1153_s2] ss:$0 sm:$0xff] (!%p838_p11) }
  0x32   : > { %859 = vmatpush3.bf16.msra.mxu0 %v949_v15  ;;  %v966_v32 = vld [vmem:[%s1088_s7 + $0xb0] sm:$0xff]   ;;  %v970_v36 = vld [vmem:[%s1088_s7 + $0xb8] sm:$0xff]  }
  0x33   : > { %881 = vmatpush3.bf16.msra.mxu1 %v950_v16  ;;  %860 = vmatprep.subr.bf16.mxu0 %v951_v17  ;;  %v971_v37 = vld [vmem:[%s1090_s8] ss:$16 sps:$4 sm:$0xff]   ;;  %v973_v38 = vld [vmem:[%s1090_s8 + $0x4] ss:$16 sps:$4 sm:$0xff]   ;;  %v974_v39 = vld [vmem:[%s1090_s8 + $0x8] ss:$16 sps:$4 sm:$0xff]  }
  0x34   : > { %882 = vmatprep.subr.bf16.mxu1 %v952_v18  ;;  %v976_v40 = vld [vmem:[%s1090_s8 + $0xc] ss:$16 sps:$4 sm:$0xff]   ;;  %600 = vmatprep.mubr.bf16.mxu0 %v973_v38 }
  0x35   : > { %641 = vmatprep.mubr.bf16.mxu1 %v976_v40 }
  0x36   : > { %861 = vmatpush3.bf16.msra.mxu0 %v953_v19 }
  0x37   : > { %883 = vmatpush3.bf16.msra.mxu1 %v954_v20  ;;  %862 = vmatprep.subr.bf16.mxu0 %v955_v21 }
  0x38   : > { %884 = vmatprep.subr.bf16.mxu1 %v956_v22 }
  0x3a   : > { %863 = vmatpush3.bf16.msra.mxu0 %v957_v23 }
  0x3b   : > { %885 = vmatpush3.bf16.msra.mxu1 %v958_v24  ;;  %864 = vmatprep.subr.bf16.mxu0 %v959_v25 }
  0x3c   : > { %886 = vmatprep.subr.bf16.mxu1 %v960_v26 }
  0x3e   : > { %865 = vmatpush3.bf16.msra.mxu0 %v961_v27 }
  0x3f   : > { %887 = vmatpush3.bf16.msra.mxu1 %v962_v28  ;;  %866 = vmatprep.subr.bf16.mxu0 %v963_v29 }
  0x40   : > { %888 = vmatprep.subr.bf16.mxu1 %v964_v30 }
  0x42   : > { %867 = vmatpush3.bf16.msra.mxu0 %v965_v31 }
  0x43   : > { %889 = vmatpush3.bf16.msra.mxu1 %v966_v32  ;;  %868 = vmatprep.subr.bf16.mxu0 %v967_v33 }
  0x44   : > { %890 = vmatprep.subr.bf16.mxu1 %v968_v34 }
  0x46   : > { %869 = vmatpush3.bf16.msra.mxu0 %v969_v35 }
  0x47   : > { %891 = vmatpush3.bf16.msra.mxu1 %v970_v36 }
  0x49   : > { %601 = vmatmul.mubr.bf16.vlgmr.msra.gmra.mrb[0].mxu0 %v971_v37 }
  0x4a   : > { %642 = vmatmul.mubr.bf16.vlgmr.msra.gmra.mrb[0].mxu1 %v974_v39 }
 0x11c   : > { %v870_v41 = vpop.f32.mrb[0].mxu0 }
 0x11d   : > { %v892_v42 = vpop.f32.mrb[0].mxu1  ;;  %v871_v43 = vpop.f32.mrb[1].mxu0 }
 0x11e   : > { %v872_v44 = vadd.f32 %v871_v43, %v870_v41  ;;  %v893_v45 = vpop.f32.mrb[1].mxu1  ;;  %v873_v46 = vpop.f32.mrb[2].mxu0 }
 0x11f   : > { %v894_v47 = vadd.f32 %v893_v45, %v892_v42  ;;  %v895_v48 = vpop.f32.mrb[2].mxu1  ;;  %v874_v49 = vpop.f32.mrb[3].mxu0 }
 0x120   : > { %v875_v51 = vadd.f32 %v874_v49, %v873_v46  ;;  %v896_v52 = vpop.f32.mrb[3].mxu1 }
 0x121   : > { %v644_v53 = vadd.f32 %v894_v47, %v872_v44  ;;  %v897_v54 = vadd.f32 %v896_v52, %v895_v48  ;;  %657 = sbr.rel (%p838_p11) target bundleno = 308 (0x134), region = 63 }
 0x123   : > { %v650_v56 = vadd.f32 %v644_v53, %v286_v50  ;;  %v647_v57 = vadd.f32 %v897_v54, %v875_v51 }
 0x125   : > { %652 = vst [vmem:[#allocation2] sm:$0xff] %v650_v56  ;;  %v651_v58 = vadd.f32 %v647_v57, %v287_v55 }
 0x127   : > { %653 = vst [vmem:[#allocation2 + $0x8] sm:$0xff] %v651_v58 }
 0x12c   : > { %v658_v59 = vld [vmem:[#allocation2] sm:$0xff] }
 0x12d   : > { %v667_v62 = vadd.f32 %v839_v61, %v658_v59 }
 0x12e   : > { %v659_v60 = vld [vmem:[#allocation2 + $0x8] sm:$0xff] }
 0x12f   : > { %v668_v63 = vadd.f32 %v839_v61, %v659_v60 }
 0x131   : > { %v852_v0 = vpack.c.bf16 %v668_v63, %v667_v62 }
 0x133   : > { %853 = vst [vmem:[%s1154_s3] sm:$0xff] %v852_v0  }
 0x134 PF: > { %s13_s16 = sadd.s32 1, %s1015_s16   ;;  %s1155_s12 = smov %s1003_s13 }
 0x135   : > { %p10_p12 = scmp.ge.s32.totalorder %s13_s16, 6   ;;  %s1156_s13 = smov %s1073_s20 }
 0x136   : > { %s1157_s14 = smov %s1011_s15  ;;  %s1158_s15 = smov %s1160_s17 }
 0x137   :  { %12 = sbr.rel (!%p10_p12) target bundleno = 3 (0x3), region = 104 }

// kernel: bert_forward.21
= control target key start
LH: loop header
LB: loop body
LE: loop exit
PB: predicated region body
PF: predicated region fallthrough
CT: control target
= control target key end

     0   :  { %s1077_s12 = smov 0   ;;  %s1079_s13 = smov 0   ;;  %s1262_s0 = inlined_call_operand.vmem [shape: bf16[16,128], index: 0, kind: input, shape index: {}]   ;;  %s1263_s1 = inlined_call_operand.vmem [shape: bf16[128,2048], index: 1, kind: input, shape index: {}]   ;;  %s1264_s2 = inlined_call_operand.vmem [shape: f32[1,2048], index: 2, kind: input, shape index: {}]   ;;  %s1265_s3 = inlined_call_operand.vmem [shape: bf16[16,2048], index: 3, kind: output, shape index: {}]  }
   0x1   :  { %s1081_s14 = smov 0   ;;  %s1083_s15 = smov 0  }
   0x2   :  { %s1085_s16 = smov 0  }
   0x3 LB: > { %s28_s17 = sadd.s32 1, %s1050_s15  ;;  %s866_s18 = sadd.s32 4294967295, %s1054_s16   ;;  %s1054_s16 = sphi %s1085_s16, %s13_s16   ;;  %s1050_s15 = sphi %s1083_s15, %s1270_s15   ;;  %s1046_s14 = sphi %s1081_s14, %s1269_s14   ;;  %s1042_s13 = sphi %s1079_s13, %s1268_s13   ;;  %s1038_s12 = sphi %s1077_s12, %s1267_s12  }
   0x4   : > { %p30_p0 = scmp.ge.s32.totalorder %s28_s17, 4  ;;  %p76_p1 = scmp.ne.s32.totalorder %s1042_s13, %s1038_s12 }
   0x5   : > { %p77_p2 = scmp.eq.s32.totalorder %s1054_s16, 0  ;;  %p134_p4 = scmp.eq.s32.totalorder %s866_s18, 3 }
   0x6   : > { %s1272_s17 = smov (%p30_p0, %s28_s17), 0  ;;  %s69_s20 = sadd.s32 1, %s1042_s13 }
   0x7   : > { %p78_p3 = por %p77_p2, %p76_p1  ;;  %s65_s19 = ssub.s32 %s1050_s15, %s1272_s17 }
   0x8   : > { %p67_p5 = scmp.eq.s32.totalorder %s65_s19, 0  ;;  %p1112_p6 = por %p134_p4, %p76_p1 }
   0x9   : > { %p870_p7 = scmp.ge.s32.totalorder %s1054_s16, 4 }
   0xa   : > { %s1117_s22 = scalar_select %p67_p5, %s1042_s13, %s69_s20  }
   0xb   : > { %168 = sbr.rel (%p870_p7) target bundleno = 38 (0x26), region = 20 }
  0x12   : > { %171 = sbr.rel (!%p78_p3) target bundleno = 38 (0x26), region = 24  ;;  %s173_s23 = sand.u32 (%p78_p3), 1, %s1042_s13  }
  0x13   : > { %s920_s24 = sshll.u32 (%p78_p3), %s1050_s15, 4  ;;  %s871_s25 = sshll.u32 (%p78_p3), %s173_s23, 8 }
  0x14   : > { %s1125_s28 = scalar_lea.vmem (%p78_p3), %s1263_s1, %s920_s24  ;;  %s1130_s29 = scalar_lea.vmem (%p78_p3), [#allocation3], %s871_s25 }
  0x15   : > { %v194_v0 = vld [vmem:[%s1125_s28] sm:$0xff] (%p78_p3)  ;;  %v196_v1 = vld [vmem:[%s1125_s28 + $0x8] sm:$0xff] (%p78_p3) }
  0x16   : > { %v198_v2 = vld [vmem:[%s1125_s28 + $0x40] sm:$0xff] (%p78_p3)  ;;  %195 = vst [vmem:[%s1130_s29] sm:$0xff] (%p78_p3), %v194_v0  ;;  %197 = vst [vmem:[%s1130_s29 + $0x8] sm:$0xff] (%p78_p3), %v196_v1  ;;  %v200_v3 = vld [vmem:[%s1125_s28 + $0x48] sm:$0xff] (%p78_p3) }
  0x17   : > { %199 = vst [vmem:[%s1130_s29 + $0x10] sm:$0xff] (%p78_p3), %v198_v2  ;;  %v202_v4 = vld [vmem:[%s1125_s28 + $0x80] sm:$0xff] (%p78_p3)  ;;  %v204_v5 = vld [vmem:[%s1125_s28 + $0x88] sm:$0xff] (%p78_p3)  ;;  %201 = vst [vmem:[%s1130_s29 + $0x18] sm:$0xff] (%p78_p3), %v200_v3 }
  0x18   : > { %203 = vst [vmem:[%s1130_s29 + $0x20] sm:$0xff] (%p78_p3), %v202_v4  ;;  %205 = vst [vmem:[%s1130_s29 + $0x28] sm:$0xff] (%p78_p3), %v204_v5  ;;  %v206_v6 = vld [vmem:[%s1125_s28 + $0xc0] sm:$0xff] (%p78_p3)  ;;  %v208_v7 = vld [vmem:[%s1125_s28 + $0xc8] sm:$0xff] (%p78_p3) }
  0x19   : > { %v210_v8 = vld [vmem:[%s1125_s28 + $0x100] sm:$0xff]  ;;  %207 = vst [vmem:[%s1130_s29 + $0x30] sm:$0xff] %v206_v6  ;;  %209 = vst [vmem:[%s1130_s29 + $0x38] sm:$0xff] %v208_v7  ;;  %v212_v9 = vld [vmem:[%s1125_s28 + $0x108] sm:$0xff] }
  0x1a   : > { %211 = vst [vmem:[%s1130_s29 + $0x40] sm:$0xff] %v210_v8  ;;  %v214_v10 = vld [vmem:[%s1125_s28 + $0x140] sm:$0xff]  ;;  %v216_v11 = vld [vmem:[%s1125_s28 + $0x148] sm:$0xff]  ;;  %213 = vst [vmem:[%s1130_s29 + $0x48] sm:$0xff] %v212_v9 }
  0x1b   : > { %215 = vst [vmem:[%s1130_s29 + $0x50] sm:$0xff] %v214_v10  ;;  %217 = vst [vmem:[%s1130_s29 + $0x58] sm:$0xff] %v216_v11  ;;  %v218_v12 = vld [vmem:[%s1125_s28 + $0x180] sm:$0xff]  ;;  %v220_v13 = vld [vmem:[%s1125_s28 + $0x188] sm:$0xff] }
  0x1c   : > { %v222_v14 = vld [vmem:[%s1125_s28 + $0x1c0] sm:$0xff]  ;;  %219 = vst [vmem:[%s1130_s29 + $0x60] sm:$0xff] %v218_v12  ;;  %221 = vst [vmem:[%s1130_s29 + $0x68] sm:$0xff] %v220_v13  ;;  %v224_v15 = vld [vmem:[%s1125_s28 + $0x1c8] sm:$0xff] }
  0x1d   : > { %223 = vst [vmem:[%s1130_s29 + $0x70] sm:$0xff] %v222_v14  ;;  %v226_v16 = vld [vmem:[%s1125_s28 + $0x200] sm:$0xff]  ;;  %v228_v17 = vld [vmem:[%s1125_s28 + $0x208] sm:$0xff]  ;;  %225 = vst [vmem:[%s1130_s29 + $0x78] sm:$0xff] %v224_v15 }
  0x1e   : > { %227 = vst [vmem:[%s1130_s29 + $0x80] sm:$0xff] %v226_v16  ;;  %229 = vst [vmem:[%s1130_s29 + $0x88] sm:$0xff] %v228_v17  ;;  %v230_v18 = vld [vmem:[%s1125_s28 + $0x240] sm:$0xff]  ;;  %v232_v19 = vld [vmem:[%s1125_s28 + $0x248] sm:$0xff] }
  0x1f   : > { %v234_v20 = vld [vmem:[%s1125_s28 + $0x280] sm:$0xff]  ;;  %231 = vst [vmem:[%s1130_s29 + $0x90] sm:$0xff] %v230_v18  ;;  %233 = vst [vmem:[%s1130_s29 + $0x98] sm:$0xff] %v232_v19  ;;  %v236_v21 = vld [vmem:[%s1125_s28 + $0x288] sm:$0xff] }
  0x20   : > { %235 = vst [vmem:[%s1130_s29 + $0xa0] sm:$0xff] %v234_v20  ;;  %v238_v22 = vld [vmem:[%s1125_s28 + $0x2c0] sm:$0xff]  ;;  %v240_v23 = vld [vmem:[%s1125_s28 + $0x2c8] sm:$0xff]  ;;  %237 = vst [vmem:[%s1130_s29 + $0xa8] sm:$0xff] %v236_v21 }
  0x21   : > { %239 = vst [vmem:[%s1130_s29 + $0xb0] sm:$0xff] %v238_v22  ;;  %241 = vst [vmem:[%s1130_s29 + $0xb8] sm:$0xff] %v240_v23  ;;  %v242_v24 = vld [vmem:[%s1125_s28 + $0x300] sm:$0xff]  ;;  %v244_v25 = vld [vmem:[%s1125_s28 + $0x308] sm:$0xff] }
  0x22   : > { %v246_v26 = vld [vmem:[%s1125_s28 + $0x340] sm:$0xff]  ;;  %243 = vst [vmem:[%s1130_s29 + $0xc0] sm:$0xff] %v242_v24  ;;  %245 = vst [vmem:[%s1130_s29 + $0xc8] sm:$0xff] %v244_v25  ;;  %v248_v27 = vld [vmem:[%s1125_s28 + $0x348] sm:$0xff] }
  0x23   : > { %247 = vst [vmem:[%s1130_s29 + $0xd0] sm:$0xff] %v246_v26  ;;  %v250_v28 = vld [vmem:[%s1125_s28 + $0x380] sm:$0xff]  ;;  %v252_v29 = vld [vmem:[%s1125_s28 + $0x388] sm:$0xff]  ;;  %249 = vst [vmem:[%s1130_s29 + $0xd8] sm:$0xff] %v248_v27 }
  0x24   : > { %251 = vst [vmem:[%s1130_s29 + $0xe0] sm:$0xff] %v250_v28  ;;  %253 = vst [vmem:[%s1130_s29 + $0xe8] sm:$0xff] %v252_v29  ;;  %v254_v30 = vld [vmem:[%s1125_s28 + $0x3c0] sm:$0xff]  ;;  %v256_v31 = vld [vmem:[%s1125_s28 + $0x3c8] sm:$0xff] }
  0x25   : > { %255 = vst [vmem:[%s1130_s29 + $0xf0] sm:$0xff] %v254_v30  ;;  %257 = vst [vmem:[%s1130_s29 + $0xf8] sm:$0xff] %v256_v31 }
  0x26 PF: > { %p874_p8 = scmp.ge.s32.totalorder %s1054_s16, 1  ;;  %p270_p9 = scmp.lt.s32.totalorder %s1054_s16, 5 }
  0x28   : > { %p271_p10 = pnand %p874_p8, %p270_p9 }
  0x29   : > { %s277_s30 = sand.u32 (!%p271_p10), 1, %s1038_s12   ;;  %v1056_v32 = vmov (!%p271_p10), 0   ;;  %v1015_v1 = vld [vmem:[%s1262_s0] sm:$0xff] (!%p271_p10)   ;;  %s877_s8 = sshll.u32 (!%p271_p10), %s1046_s14, 2  ;;  %v665_v2 = vlaneseq (!%p271_p10) }
  0x2a   : > { %274 = sbr.rel (%p271_p10) target bundleno = 307 (0x133), region = 51  ;;  %s875_s4 = sshll.u32 (!%p271_p10), %s277_s30, 8  ;;  %582 = vmatprep.mubr.bf16.mxu0 (!%p271_p10), %v1056_v32  ;;  %625 = vmatprep.mubr.bf16.mxu1 (!%p271_p10), %v1056_v32 }
  0x2b   : > { %s1198_s5 = scalar_lea.vmem (!%p271_p10), [#allocation3], %s875_s4  ;;  %p323_p11 = scmp.lt.s32.totalorder (!%p271_p10), %s877_s8, 15  ;;  %v666_v3 = vshrl.u32 (!%p271_p10), %v665_v2, 7 }
  0x2c   : > { %v967_v33 = vld [vmem:[%s1198_s5 + $0x4] ss:$16 sps:$4 sm:$0xff] (!%p271_p10)   ;;  %v969_v34 = vld [vmem:[%s1198_s5 + $0xc] ss:$16 sps:$4 sm:$0xff] (!%p271_p10)   ;;  %v971_v35 = vld [vmem:[%s1198_s5] ss:$16 sps:$4 sm:$0xff] (!%p271_p10)  }
  0x2d   : > { %550 = vmatprep.subr.bf16.mxu0 (!%p271_p10), %v967_v33  ;;  %v972_v36 = vld [vmem:[%s1198_s5 + $0x8] ss:$16 sps:$4 sm:$0xff] (!%p271_p10)   ;;  %593 = vmatprep.subr.bf16.mxu1 (!%p271_p10), %v969_v34  ;;  %v973_v37 = vld [vmem:[%s1198_s5 + $0x24] ss:$16 sps:$4 sm:$0xff] (!%p271_p10)   ;;  %v975_v38 = vld [vmem:[%s1198_s5 + $0x2c] ss:$16 sps:$4 sm:$0xff] (!%p271_p10)  }
  0x2e   : > { %551 = vmatpush1.bf16.msra.mxu0 (!%p271_p10), %v971_v35  ;;  %594 = vmatpush1.bf16.msra.mxu1 (!%p271_p10), %v972_v36  ;;  %v977_v39 = vld [vmem:[%s1198_s5 + $0x20] ss:$16 sps:$4 sm:$0xff] (!%p271_p10)   ;;  %v978_v40 = vld [vmem:[%s1198_s5 + $0x28] ss:$16 sps:$4 sm:$0xff] (!%p271_p10)   ;;  %v979_v41 = vld [vmem:[%s1198_s5 + $0x44] ss:$16 sps:$4 sm:$0xff] (!%p271_p10)  }
  0x2f   : > { %552 = vmatprep.subr.bf16.mxu0 (!%p271_p10), %v973_v37  ;;  %595 = vmatprep.subr.bf16.mxu1 (!%p271_p10), %v975_v38  ;;  %v981_v42 = vld [vmem:[%s1198_s5 + $0x4c] ss:$16 sps:$4 sm:$0xff] (!%p271_p10)   ;;  %v983_v43 = vld [vmem:[%s1198_s5 + $0x40] ss:$16 sps:$4 sm:$0xff] (!%p271_p10)   ;;  %v984_v44 = vld [vmem:[%s1198_s5 + $0x48] ss:$16 sps:$4 sm:$0xff] (!%p271_p10)  }
  0x30   : > { %v985_v45 = vld [vmem:[%s1198_s5 + $0x64] ss:$16 sps:$4 sm:$0xff] (!%p271_p10)   ;;  %v987_v46 = vld [vmem:[%s1198_s5 + $0x6c] ss:$16 sps:$4 sm:$0xff] (!%p271_p10)   ;;  %v989_v47 = vld [vmem:[%s1198_s5 + $0x60] ss:$16 sps:$4 sm:$0xff] (!%p271_p10)  }
  0x31   : > { %v990_v48 = vld [vmem:[%s1198_s5 + $0x68] ss:$16 sps:$4 sm:$0xff]   ;;  %v991_v49 = vld [vmem:[%s1198_s5 + $0x84] ss:$16 sps:$4 sm:$0xff]   ;;  %v993_v50 = vld [vmem:[%s1198_s5 + $0x8c] ss:$16 sps:$4 sm:$0xff]  }
  0x32   : > { %553 = vmatpush1.bf16.msra.mxu0 %v977_v39  ;;  %596 = vmatpush1.bf16.msra.mxu1 %v978_v40  ;;  %v995_v51 = vld [vmem:[%s1198_s5 + $0x80] ss:$16 sps:$4 sm:$0xff]   ;;  %v996_v52 = vld [vmem:[%s1198_s5 + $0x88] ss:$16 sps:$4 sm:$0xff]   ;;  %v997_v53 = vld [vmem:[%s1198_s5 + $0xa4] ss:$16 sps:$4 sm:$0xff]  }
  0x33   : > { %554 = vmatprep.subr.bf16.mxu0 %v979_v41  ;;  %597 = vmatprep.subr.bf16.mxu1 %v981_v42  ;;  %v999_v54 = vld [vmem:[%s1198_s5 + $0xac] ss:$16 sps:$4 sm:$0xff]   ;;  %v1001_v55 = vld [vmem:[%s1198_s5 + $0xa0] ss:$16 sps:$4 sm:$0xff]   ;;  %v1002_v56 = vld [vmem:[%s1198_s5 + $0xa8] ss:$16 sps:$4 sm:$0xff]  }
  0x34   : > { %v1003_v57 = vld [vmem:[%s1198_s5 + $0xc4] ss:$16 sps:$4 sm:$0xff]   ;;  %v1005_v58 = vld [vmem:[%s1198_s5 + $0xcc] ss:$16 sps:$4 sm:$0xff]   ;;  %v1007_v59 = vld [vmem:[%s1198_s5 + $0xc0] ss:$16 sps:$4 sm:$0xff]  }
  0x35   : > { %v1008_v60 = vld [vmem:[%s1198_s5 + $0xc8] ss:$16 sps:$4 sm:$0xff]   ;;  %v1009_v61 = vld [vmem:[%s1198_s5 + $0xe4] ss:$16 sps:$4 sm:$0xff]   ;;  %v1011_v62 = vld [vmem:[%s1198_s5 + $0xec] ss:$16 sps:$4 sm:$0xff]  }
  0x36   : > { %555 = vmatpush1.bf16.msra.mxu0 %v983_v43  ;;  %598 = vmatpush1.bf16.msra.mxu1 %v984_v44  ;;  %v1013_v63 = vld [vmem:[%s1198_s5 + $0xe0] ss:$16 sps:$4 sm:$0xff]   ;;  %v1014_v0 = vld [vmem:[%s1198_s5 + $0xe8] ss:$16 sps:$4 sm:$0xff]   ;;  %s1274_s8 = smov (!%p323_p11, %s877_s8), 15  ;;  %v667_v4 = vsub.s32 0, %v666_v3 }
  0x37   : > { %556 = vmatprep.subr.bf16.mxu0 %v985_v45  ;;  %599 = vmatprep.subr.bf16.mxu1 %v987_v46  ;;  %s325_s11 = scalar_lea.vmem %s1264_s2, %s1274_s8  ;;  %v675_v5 = vsub.s32 2, %v666_v3  ;;  %v671_v7 = vsub.s32 1, %v666_v3  ;;  %v679_v8 = vsub.s32 3, %v666_v3  ;;  %s876_s18 = sshll.u32 %s277_s30, 5 }
  0x38   : > { %v663_v6 = vld [vmem:[%s325_s11] sm:$0xf]  ;;  %s310_s12 = scalar_lea.vmem [#allocation4], %s876_s18  ;;  %s925_s19 = sshll.u32 (%p1112_p6), %s1046_s14, 4 }
  0x39   : > { %v668_v9 = vrot.slane %v663_v6, %v667_v4  ;;  %v676_v10 = vrot.slane %v663_v6, %v675_v5  ;;  %v672_v11 = vrot.slane %v663_v6, %v671_v7  ;;  %v680_v12 = vrot.slane %v663_v6, %v679_v8  ;;  %s741_s24 = scalar_lea.vmem (%p1112_p6), %s1265_s3, %s925_s19 }
  0x3a   : > { %557 = vmatpush1.bf16.msra.mxu0 %v989_v47  ;;  %600 = vmatpush1.bf16.msra.mxu1 %v990_v48 }
  0x3b   : > { %558 = vmatprep.subr.bf16.mxu0 %v991_v49  ;;  %601 = vmatprep.subr.bf16.mxu1 %v993_v50 }
  0x3e   : > { %559 = vmatpush1.bf16.msra.mxu0 %v995_v51  ;;  %602 = vmatpush1.bf16.msra.mxu1 %v996_v52 }
  0x3f   : > { %560 = vmatprep.subr.bf16.mxu0 %v997_v53  ;;  %603 = vmatprep.subr.bf16.mxu1 %v999_v54 }
  0x42   : > { %561 = vmatpush1.bf16.msra.mxu0 %v1001_v55  ;;  %604 = vmatpush1.bf16.msra.mxu1 %v1002_v56 }
  0x43   : > { %562 = vmatprep.subr.bf16.mxu0 %v1003_v57  ;;  %605 = vmatprep.subr.bf16.mxu1 %v1005_v58 }
  0x46   : > { %563 = vmatpush1.bf16.msra.mxu0 %v1007_v59  ;;  %606 = vmatpush1.bf16.msra.mxu1 %v1008_v60 }
  0x47   : > { %564 = vmatprep.subr.bf16.mxu0 %v1009_v61  ;;  %607 = vmatprep.subr.bf16.mxu1 %v1011_v62 }
  0x4a   : > { %565 = vmatpush1.bf16.msra.mxu0 %v1013_v63  ;;  %608 = vmatpush1.bf16.msra.mxu1 %v1014_v0 }
  0x4d   : > { %583 = vmatmul.mubr.bf16.vlgmr.msra.gmra.mrb[0].mxu0 %v1015_v1  ;;  %626 = vmatmul.mubr.bf16.vlgmr.msra.gmra.mrb[0].mxu1 %v1015_v1 }
 0x120   : > { %v584_v13 = vpop.f32.mrb[0].mxu0  ;;  %v627_v14 = vpop.f32.mrb[0].mxu1 }
 0x121   : > { %v685_v15 = vadd.f32 %v668_v9, %v584_v13  ;;  %v687_v16 = vadd.f32 %v676_v10, %v627_v14  ;;  %v586_v17 = vpop.f32.mrb[1].mxu0  ;;  %v629_v18 = vpop.f32.mrb[1].mxu1 }
 0x122   : > { %v686_v19 = vadd.f32 %v672_v11, %v586_v17  ;;  %v688_v20 = vadd.f32 %v680_v12, %v629_v18  ;;  %v588_v21 = vpop.f32.mrb[2].mxu0  ;;  %v631_v22 = vpop.f32.mrb[2].mxu1 }
 0x123   : > { %v693_v23 = vmax.f32 %v685_v15, 0.0  ;;  %v695_v24 = vmax.f32 %v687_v16, 0.0  ;;  %v689_v25 = vadd.f32 %v668_v9, %v588_v21  ;;  %v691_v26 = vadd.f32 %v676_v10, %v631_v22  ;;  %v590_v27 = vpop.f32.mrb[3].mxu0  ;;  %v633_v28 = vpop.f32.mrb[3].mxu1 }
 0x124   : > { %v694_v29 = vmax.f32 %v686_v19, 0.0  ;;  %v696_v30 = vmax.f32 %v688_v20, 0.0  ;;  %v690_v31 = vadd.f32 %v672_v11, %v590_v27  ;;  %v692_v32 = vadd.f32 %v680_v12, %v633_v28  ;;  %735 = sbr.rel (!%p1112_p6) target bundleno = 307 (0x133), region = 67 }
 0x125   : > { %v697_v33 = vmax.f32 %v689_v25, 0.0  ;;  %v699_v34 = vmax.f32 %v691_v26, 0.0 }
 0x126   : > { %v921_v35 = vpack.c.bf16 %v694_v29, %v693_v23  ;;  %v922_v36 = vpack.c.bf16 %v696_v30, %v695_v24  ;;  %v698_v37 = vmax.f32 %v690_v31, 0.0  ;;  %v700_v38 = vmax.f32 %v692_v32, 0.0 }
 0x128   : > { %725 = vst [vmem:[%s310_s12] sm:$0xff] %v921_v35  ;;  %726 = vst [vmem:[%s310_s12 + $0x8] sm:$0xff] %v922_v36  ;;  %v923_v39 = vpack.c.bf16 %v698_v37, %v697_v33  ;;  %v924_v40 = vpack.c.bf16 %v700_v38, %v699_v34 }
 0x12a   : > { %727 = vst [vmem:[%s310_s12 + $0x10] sm:$0xff] %v923_v39  ;;  %728 = vst [vmem:[%s310_s12 + $0x18] sm:$0xff] %v924_v40 }
 0x12f   : > { %v754_v41 = vld [vmem:[%s310_s12] sm:$0xff]  ;;  %v756_v42 = vld [vmem:[%s310_s12 + $0x8] sm:$0xff] }
 0x130   : > { %755 = vst [vmem:[%s741_s24] sm:$0xff] %v754_v41  ;;  %757 = vst [vmem:[%s741_s24 + $0x8] sm:$0xff] %v756_v42 }
 0x131   : > { %v758_v43 = vld [vmem:[%s310_s12 + $0x10] sm:$0xff]  ;;  %v760_v44 = vld [vmem:[%s310_s12 + $0x18] sm:$0xff] }
 0x132   : > { %759 = vst [vmem:[%s741_s24 + $0x40] sm:$0xff] %v758_v43  ;;  %761 = vst [vmem:[%s741_s24 + $0x48] sm:$0xff] %v760_v44 }
 0x133 PF: > { %s13_s16 = sadd.s32 1, %s1054_s16   ;;  %s1267_s12 = smov %s1042_s13 }
 0x134   : > { %p10_p12 = scmp.ge.s32.totalorder %s13_s16, 6   ;;  %s1268_s13 = smov %s1117_s22 }
 0x135   : > { %s1269_s14 = smov %s1050_s15  ;;  %s1270_s15 = smov %s1272_s17 }
 0x136   :  { %12 = sbr.rel (!%p10_p12) target bundleno = 3 (0x3), region = 127 }

// kernel: bert_forward.31
= control target key start
LH: loop header
LB: loop body
LE: loop exit
PB: predicated region body
PF: predicated region fallthrough
CT: control target
= control target key end

     0   :  { %v193_v0 = vmov 0.0   ;;  %vm194_vm0 = vmmov 0   ;;  %s248_s1 = inlined_call_operand.vmem [shape: bf16[128,128], index: 1, kind: input, shape index: {}]   ;;  %s249_s0 = inlined_call_operand.vmem [shape: bf16[8,128], index: 0, kind: input, shape index: {}]   ;;  %s250_s2 = inlined_call_operand.vmem [shape: f32[1,128], index: 2, kind: input, shape index: {}]   ;;  %s251_s3 = inlined_call_operand.vmem [shape: f32[8,128], index: 3, kind: output, shape index: {}]  }
   0x1   :  { %163 = vmatprep.subr.bf16.mxu0 %v193_v0  ;;  %v185_v1 = vld [vmem:[%s248_s1] sm:$0xff]   ;;  %179 = vmatprep.mubr.msk.bf16.mxu0 %vm194_vm0, %v193_v0  ;;  %v186_v2 = vld [vmem:[%s248_s1 + $0x8] sm:$0xff]   ;;  %v187_v3 = vld [vmem:[%s248_s1 + $0x10] sm:$0xff]  }
   0x2   :  { %164 = vmatpush3.bf16.msra.mxu0 %v185_v1  ;;  %v188_v4 = vld [vmem:[%s248_s1 + $0x18] sm:$0xff]   ;;  %v189_v5 = vld [vmem:[%s248_s1 + $0x20] sm:$0xff]   ;;  %v190_v6 = vld [vmem:[%s248_s1 + $0x28] sm:$0xff]  }
   0x3   :  { %165 = vmatprep.subr.bf16.mxu0 %v193_v0  ;;  %v191_v7 = vld [vmem:[%s248_s1 + $0x30] sm:$0xff]   ;;  %v192_v8 = vld [vmem:[%s248_s1 + $0x38] sm:$0xff]   ;;  %v21_v9 = vld [vmem:[%s249_s0] sm:$0xf] }
   0x4   :  { %v153_v10 = vld [vmem:[%s250_s2] ss:$0 sm:$0xff] }
   0x6   :  { %166 = vmatpush3.bf16.msra.mxu0 %v186_v2 }
   0x7   :  { %167 = vmatprep.subr.bf16.mxu0 %v193_v0 }
   0xa   :  { %168 = vmatpush3.bf16.msra.mxu0 %v187_v3 }
   0xb   :  { %169 = vmatprep.subr.bf16.mxu0 %v193_v0 }
   0xe   :  { %170 = vmatpush3.bf16.msra.mxu0 %v188_v4 }
   0xf   :  { %171 = vmatprep.subr.bf16.mxu0 %v193_v0 }
  0x12   :  { %172 = vmatpush3.bf16.msra.mxu0 %v189_v5 }
  0x13   :  { %173 = vmatprep.subr.bf16.mxu0 %v193_v0 }
  0x16   :  { %174 = vmatpush3.bf16.msra.mxu0 %v190_v6 }
  0x17   :  { %175 = vmatprep.subr.bf16.mxu0 %v193_v0 }
  0x1a   :  { %176 = vmatpush3.bf16.msra.mxu0 %v191_v7 }
  0x1b   :  { %177 = vmatprep.subr.bf16.mxu0 %v193_v0 }
  0x1e   :  { %178 = vmatpush3.bf16.msra.mxu0 %v192_v8 }
  0x21   :  { %180 = vmatmul.mubr.bf16.vlgmr.msra.gmra.mrb[0].mxu0 %v21_v9 }
  0xf4   :  { %v120_v11 = vpop.f32.mrb[0].mxu0 }
  0xf5   :  { %v139_v12 = vadd.f32 %v153_v10, %v120_v11  ;;  %v181_v13 = vpop.f32.mrb[1].mxu0 }
  0xf6   :  { %v123_v14 = vpop.f32.mrb[2].mxu0 }
  0xf7   :  { %140 = vst [vmem:[%s251_s3] sm:$0xff] %v139_v12  ;;  %v182_v15 = vpop.f32.mrb[3].mxu0 }

</bundles_post_ra>
